<compile_context>
chip_gen: v7x
topology: tpu7x:2x2x1
jax: 0.10.0
libtpu: 0.0.40
codegen_flags: <defaults>
</compile_context>

<pallas_src>
import functools
from collections import namedtuple

import jax
import jax.numpy as jnp
from jax import lax
from jax.experimental import pallas as pl
from jax.experimental.pallas import tpu as pltpu


def _round_up(x, m):
    return (x + m - 1) // m * m


_CIN1_PAD = 8                 # conv1 input channels (3) padded to sublane multiple
_C1 = 16                      # conv1 output channels
_C2 = 32                      # conv2 output channels
_BAND_PIXEL_TARGET = 6144     # target lanes per conv band (VMEM / MXU-N amortization)
_FC_TILE_TARGET = 32768       # target lanes per FC reduction tile


ConvGeom = namedtuple(
    "ConvGeom",
    ["H", "W", "H2", "W2", "band_rows", "n_bands", "Pb", "L_h1b", "L_xb", "Lx_glob"],
)


def _conv_geometry(H, W, band_rows=None):
    """Static geometry shared by one-time weight prep and the forward pass."""
    H2, W2 = H - 4, W - 4
    assert H2 >= 1 and W2 >= 1, "input spatial dims must be >= 5x5"
    if band_rows is None:
        band_rows = min(H2, max(1, _BAND_PIXEL_TARGET // W))
        for r in range(band_rows, 0, -1):   # prefer lane-dense (mult-of-128) bands
            if (r * W) % 128 == 0:
                band_rows = r
                break
    band_rows = max(1, min(band_rows, H2))
    n_bands = -(-H2 // band_rows)
    Pb = _round_up(band_rows * W, 128)          # conv2 output pixels per band
    L_h1b = _round_up(Pb + 2 * W + 2, 128)      # conv1 band length (2-row halo + taps)
    L_xb = _round_up(L_h1b + 2 * W + 2, 128)    # input band length (4-row halo + taps)
    Lx_glob = (n_bands - 1) * band_rows * W + L_xb
    return ConvGeom(H, W, H2, W2, band_rows, n_bands, Pb, L_h1b, L_xb, Lx_glob)


# ---------------------------------------------------------------------------
# Fused conv1 + ReLU + conv2 + ReLU (dropout = identity), row-banded.
# ---------------------------------------------------------------------------
def fused_conv_relu(x_bands, w1, b1, w2, b2, geo):
    """x_bands: (B, n_bands, 8, L_xb) flattened input bands (full row stride, halo'd)
       w1: (16, 72) im2col weight, b1: (16, 1); w2: (32, 144), b2: (32, 1)
       returns (B, n_bands, 32, Pb) conv2 output bands (full row stride)."""
    B = x_bands.shape[0]
    W = geo.W
    Pb, L_h1b, L_xb, n_bands = geo.Pb, geo.L_h1b, geo.L_xb, geo.n_bands
    offs = tuple(kh * W + kw for kh in range(3) for kw in range(3))
    K1 = 9 * _CIN1_PAD
    K2 = 9 * _C1

    def kernel(xb_ref, w1_ref, b1_ref, w2_ref, b2_ref, o_ref, h1_ref):
        x = xb_ref[0, 0]                                           # (8, L_xb)
        # conv1: im2col patch from 9 statically shifted lane slices, one MXU matmul.
        patch1 = jnp.concatenate([x[:, o:o + L_h1b] for o in offs], axis=0)
        h1 = jnp.dot(w1_ref[...], patch1, preferred_element_type=jnp.float32)
        h1_ref[...] = jnp.maximum(h1 + b1_ref[...], 0.0)           # dropout = id, ReLU
        # conv2 on the VMEM-resident conv1 band (never written to HBM).
        h1v = h1_ref[...]
        patch2 = jnp.concatenate([h1v[:, o:o + Pb] for o in offs], axis=0)
        h2 = jnp.dot(w2_ref[...], patch2, preferred_element_type=jnp.float32)
        o_ref[0, 0] = jnp.maximum(h2 + b2_ref[...], 0.0)           # dropout = id, ReLU

    flops = 2 * B * n_bands * (_C1 * K1 * L_h1b + _C2 * K2 * Pb)
    bytes_accessed = 4 * (B * n_bands * (_CIN1_PAD * L_xb + _C2 * Pb)
                          + _C1 * K1 + _C2 * K2 + _C1 + _C2)

    return pl.pallas_call(
        kernel,
        out_shape=jax.ShapeDtypeStruct((B, n_bands, _C2, Pb), jnp.float32),
        grid=(B, n_bands),
        in_specs=[
            pl.BlockSpec((1, 1, _CIN1_PAD, L_xb), lambda b, s: (b, s, 0, 0)),
            pl.BlockSpec((_C1, K1), lambda b, s: (0, 0)),
            pl.BlockSpec((_C1, 1), lambda b, s: (0, 0)),
            pl.BlockSpec((_C2, K2), lambda b, s: (0, 0)),
            pl.BlockSpec((_C2, 1), lambda b, s: (0, 0)),
        ],
        out_specs=pl.BlockSpec((1, 1, _C2, Pb), lambda b, s: (b, s, 0, 0)),
        scratch_shapes=[pltpu.VMEM((_C1, L_h1b), jnp.float32)],
        compiler_params=pltpu.CompilerParams(
            dimension_semantics=("parallel", "parallel")),
        cost_estimate=pl.CostEstimate(flops=flops, transcendentals=0,
                                      bytes_accessed=bytes_accessed),
    )(x_bands, w1, b1, w2, b2)


# ---------------------------------------------------------------------------
# Fully connected layer: out = x @ w.T + b, F-tiled with an f32 accumulator.
# ---------------------------------------------------------------------------
def _choose_f_tile(Pb, n_bands):
    """Largest tile (multiple of Pb, <= target) that divides F = 32*n_bands*Pb."""
    chans = _C2 * n_bands
    k = max(1, min(chans, _FC_TILE_TARGET // Pb))
    while chans % k:
        k -= 1
    return Pb * k


def linear_fc(x, w_nf, b_1n, *, f_tile):
    """x: (B, F), w_nf: (n_pad, F) lane-dense weight, b_1n: (1, n_pad)."""
    B, F = x.shape
    n_pad = w_nf.shape[0]
    assert F % f_tile == 0
    n_k = F // f_tile
    # Split the batch on the leading ("parallel") axis when large enough so both
    # v7x TensorCores work during this memory-bound layer.
    b_tile = B // 2 if (B % 16 == 0) else B
    n_b = B // b_tile

    def kernel(x_ref, w_ref, b_ref, o_ref, acc_ref):
        k = pl.program_id(1)

        @pl.when(k == 0)
        def _():
            acc_ref[...] = jnp.zeros_like(acc_ref)

        acc_ref[...] += lax.dot_general(
            x_ref[...], w_ref[...],
            dimension_numbers=(((1,), (1,)), ((), ())),      # contract F (lane dim)
            preferred_element_type=jnp.float32)

        @pl.when(k == pl.num_programs(1) - 1)
        def _():
            o_ref[...] = acc_ref[...] + b_ref[...]

    flops = 2 * B * F * n_pad
    bytes_accessed = 4 * (B * F + n_pad * F + B * n_pad + n_pad)

    return pl.pallas_call(
        kernel,
        out_shape=jax.ShapeDtypeStruct((B, n_pad), jnp.float32),
        grid=(n_b, n_k),
        in_specs=[
            pl.BlockSpec((b_tile, f_tile), lambda i, k: (i, k)),
            pl.BlockSpec((n_pad, f_tile), lambda i, k: (0, k)),
            pl.BlockSpec((1, n_pad), lambda i, k: (0, 0)),
        ],
        out_specs=pl.BlockSpec((b_tile, n_pad), lambda i, k: (i, 0)),
        scratch_shapes=[pltpu.VMEM((b_tile, n_pad), jnp.float32)],
        compiler_params=pltpu.CompilerParams(
            dimension_semantics=("parallel", "arbitrary")),
        cost_estimate=pl.CostEstimate(flops=flops, transcendentals=0,
                                      bytes_accessed=bytes_accessed),
    )(x, w_nf, b_1n)


# ---------------------------------------------------------------------------
# One-time parameter preparation (all padding / permutes kept OUT of the forward).
# ---------------------------------------------------------------------------
def init_raw_params(key, H, W, num_classes=2):
    """Random weights in PyTorch layouts (OIHW conv, [out, in] linear)."""
    k1, k2, k3, k4, k5, k6 = jax.random.split(key, 6)
    fc_in = _C2 * (H - 4) * (W - 4)   # PyTorch hardcodes 1548800 (224x224 input)
    return {
        "conv1_w": jax.random.normal(k1, (_C1, 3, 3, 3), jnp.float32) * 0.1,
        "conv1_b": jax.random.normal(k4, (_C1,), jnp.float32) * 0.1,
        "conv2_w": jax.random.normal(k2, (_C2, _C1, 3, 3), jnp.float32) * 0.05,
        "conv2_b": jax.random.normal(k5, (_C2,), jnp.float32) * 0.1,
        "fc_w": jax.random.normal(k3, (num_classes, fc_in), jnp.float32) * 0.01,
        "fc_b": jax.random.normal(k6, (num_classes,), jnp.float32) * 0.1,
    }


def _prep_conv_weight(w, cin_pad):
    """(Cout, Cin, 3, 3) -> im2col (Cout, 9*cin_pad), tap-major / channel-minor."""
    cout, cin = w.shape[0], w.shape[1]
    w_pad = jnp.pad(w, ((0, 0), (0, cin_pad - cin), (0, 0), (0, 0)))
    return jnp.transpose(w_pad, (0, 2, 3, 1)).reshape(cout, 9 * cin_pad)


def _prep_fc_weight(fc_w, geo, num_classes, n_pad):
    """Permute + zero-mask the FC weight so it consumes the band-major,
    full-row-stride conv2 output directly (flatten folded into weight prep)."""
    H2, W2, W = geo.H2, geo.W2, geo.W
    band_rows, n_bands, Pb = geo.band_rows, geo.n_bands, geo.Pb
    p = jnp.arange(Pb)
    r_local, col = p // W, p % W
    bd = jnp.arange(n_bands)
    r = bd[:, None] * band_rows + r_local[None, :]                     # (n_bands, Pb)
    valid = (r_local[None, :] < band_rows) & (r < H2) & (col[None, :] < W2)
    sp = jnp.where(valid, r * W2 + col[None, :], 0)                    # spatial index
    w_sp = fc_w.reshape(num_classes, _C2, H2 * W2)
    w_l = jnp.take(w_sp, sp.reshape(-1), axis=2)                       # (N, C, nb*Pb)
    w_l = w_l.reshape(num_classes, _C2, n_bands, Pb)
    w_l = jnp.where(valid[None, None, :, :], w_l, 0.0)
    w_l = jnp.transpose(w_l, (0, 2, 1, 3))                             # band-major
    w_l = w_l.reshape(num_classes, n_bands * _C2 * Pb)
    return jnp.pad(w_l, ((0, n_pad - num_classes), (0, 0)))


def prepare_params(raw, H, W, num_classes=2, band_rows=None):
    geo = _conv_geometry(H, W, band_rows)
    n_pad = _round_up(num_classes, 8)             # sublane minimum (NOT 128)
    return {
        "conv1_w2d": _prep_conv_weight(raw["conv1_w"], _CIN1_PAD),
        "conv1_b": raw["conv1_b"].reshape(_C1, 1),
        "conv2_w2d": _prep_conv_weight(raw["conv2_w"], _C1),
        "conv2_b": raw["conv2_b"].reshape(_C2, 1),
        "fc_w": _prep_fc_weight(raw["fc_w"], geo, num_classes, n_pad),
        "fc_b": jnp.pad(raw["fc_b"].reshape(1, num_classes),
                        ((0, 0), (0, n_pad - num_classes))),
    }


# ---------------------------------------------------------------------------
# Full forward pass.
# ---------------------------------------------------------------------------
@functools.partial(jax.jit, static_argnames=("num_classes", "band_rows"))
def cnn_model_forward(x, params, *, num_classes=2, band_rows=None):
    B, Cin, H, W = x.shape
    assert Cin == 3, "CNNModel expects 3 input channels"
    geo = _conv_geometry(H, W, band_rows)

    # Band the tiny 3-channel input with a 4-row halo — the only activation copy
    # in the whole forward.  All downstream slicing is static / in-kernel.
    x_flat = jnp.pad(x.reshape(B, Cin, H * W),
                     ((0, 0), (0, _CIN1_PAD - Cin), (0, geo.Lx_glob - H * W)))
    x_bands = jnp.stack(
        [lax.slice_in_dim(x_flat, s * geo.band_rows * W,
                          s * geo.band_rows * W + geo.L_xb, axis=2)
         for s in range(geo.n_bands)], axis=1)            # (B, n_bands, 8, L_xb)

    h2 = fused_conv_relu(x_bands, params["conv1_w2d"], params["conv1_b"],
                         params["conv2_w2d"], params["conv2_b"], geo)

    # Flatten is a no-copy reshape; the FC weight already matches this layout.
    F = geo.n_bands * _C2 * geo.Pb
    feat = h2.reshape(B, F)
    out = linear_fc(feat, params["fc_w"], params["fc_b"],
                    f_tile=_choose_f_tile(geo.Pb, geo.n_bands))
    return out[:, :num_classes]


# ---------------------------------------------------------------------------
# Pure-JAX reference (for correctness check).
# ---------------------------------------------------------------------------
def reference_forward(x, raw):
    def conv(h, w, b):
        y = lax.conv_general_dilated(h, w, window_strides=(1, 1), padding="VALID",
                                     dimension_numbers=("NCHW", "OIHW", "NCHW"))
        return jnp.maximum(y + b[None, :, None, None], 0.0)
    h = conv(x, raw["conv1_w"], raw["conv1_b"])
    h = conv(h, raw["conv2_w"], raw["conv2_b"])
    feat = h.reshape(h.shape[0], -1)
    return feat @ raw["fc_w"].T + raw["fc_b"][None, :]


if __name__ == "__main__":
    # Small deterministic example: batch=2, 3-channel 16x16 images (NCHW).
    key = jax.random.PRNGKey(0)
    kx, kp = jax.random.split(key)
    B, C, H, W = 2, 3, 16, 16
    num_classes = 2
    x = jax.random.normal(kx, (B, C, H, W), jnp.float32)
    raw = init_raw_params(kp, H, W, num_classes=num_classes)
    ref = reference_forward(x, raw)

    # Default (auto) banding: 8 output rows per band -> 2 bands.
    params = prepare_params(raw, H, W, num_classes=num_classes)
    out = jax.block_until_ready(cnn_model_forward(x, params, num_classes=num_classes))
    assert out.shape == (B, num_classes), out.shape
    err = float(jnp.max(jnp.abs(out - ref)))
    assert jnp.allclose(out, ref, rtol=1e-3, atol=1e-3), err

    # Explicit uneven banding (3 bands, ragged last band) exercises the halo +
    # garbage-row masking path.
    params5 = prepare_params(raw, H, W, num_classes=num_classes, band_rows=5)
    out5 = jax.block_until_ready(
        cnn_model_forward(x, params5, num_classes=num_classes, band_rows=5))
    err5 = float(jnp.max(jnp.abs(out5 - ref)))
    assert jnp.allclose(out5, ref, rtol=1e-3, atol=1e-3), err5

    print("KERNEL_OK")
</pallas_src>

<mosaic_0001>
module attributes {stable_mosaic.version = 11 : i64} {
  func.func @kernel(%arg0: i32, %arg1: i32, %arg2: memref<1x1x8x384xf32, #tpu.memory_space<vmem>>, %arg3: memref<16x72xf32, #tpu.memory_space<vmem>>, %arg4: memref<16x1xf32, #tpu.memory_space<vmem>>, %arg5: memref<32x144xf32, #tpu.memory_space<vmem>>, %arg6: memref<32x1xf32, #tpu.memory_space<vmem>>, %arg7: memref<1x1x32x128xf32, #tpu.memory_space<vmem>>, %arg8: memref<16x256xf32, #tpu.memory_space<vmem>>) attributes {dimension_semantics = [#tpu.dimension_semantics<parallel>, #tpu.dimension_semantics<parallel>], iteration_bounds = array<i64: 2, 2>, scalar_prefetch = 0 : i64, scratch_operands = 1 : i64, tpu.core_type = #tpu.core_type<tc>, window_params = [{transform_indices = @transform_0, window_bounds = array<i64: 1, 1, 8, 384>}, {pipeline_mode = #tpu.pipeline_mode<synchronous>, transform_indices = @transform_1, window_bounds = array<i64: 16, 72>}, {pipeline_mode = #tpu.pipeline_mode<synchronous>, transform_indices = @transform_2, window_bounds = array<i64: 16, 1>}, {pipeline_mode = #tpu.pipeline_mode<synchronous>, transform_indices = @transform_3, window_bounds = array<i64: 32, 144>}, {pipeline_mode = #tpu.pipeline_mode<synchronous>, transform_indices = @transform_4, window_bounds = array<i64: 32, 1>}, {transform_indices = @transform_5, window_bounds = array<i64: 1, 1, 32, 128>}]} {
    %c0 = arith.constant 0 : index
    %c0_0 = arith.constant 0 : index
    %c0_1 = arith.constant 0 : index
    %c0_2 = arith.constant 0 : index
    %0 = vector.load %arg2[%c0, %c0_0, %c0_1, %c0_2] : memref<1x1x8x384xf32, #tpu.memory_space<vmem>>, vector<1x1x8x384xf32>
    %1 = vector.shape_cast %0 : vector<1x1x8x384xf32> to vector<8x384xf32>
    %2 = vector.extract_strided_slice %1 {offsets = [0, 0], sizes = [8, 256], strides = [1, 1]} : vector<8x384xf32> to vector<8x256xf32>
    %3 = vector.extract_strided_slice %1 {offsets = [0, 1], sizes = [8, 256], strides = [1, 1]} : vector<8x384xf32> to vector<8x256xf32>
    %4 = vector.extract_strided_slice %1 {offsets = [0, 2], sizes = [8, 256], strides = [1, 1]} : vector<8x384xf32> to vector<8x256xf32>
    %5 = vector.extract_strided_slice %1 {offsets = [0, 16], sizes = [8, 256], strides = [1, 1]} : vector<8x384xf32> to vector<8x256xf32>
    %6 = vector.extract_strided_slice %1 {offsets = [0, 17], sizes = [8, 256], strides = [1, 1]} : vector<8x384xf32> to vector<8x256xf32>
    %7 = vector.extract_strided_slice %1 {offsets = [0, 18], sizes = [8, 256], strides = [1, 1]} : vector<8x384xf32> to vector<8x256xf32>
    %8 = vector.extract_strided_slice %1 {offsets = [0, 32], sizes = [8, 256], strides = [1, 1]} : vector<8x384xf32> to vector<8x256xf32>
    %9 = vector.extract_strided_slice %1 {offsets = [0, 33], sizes = [8, 256], strides = [1, 1]} : vector<8x384xf32> to vector<8x256xf32>
    %10 = vector.extract_strided_slice %1 {offsets = [0, 34], sizes = [8, 256], strides = [1, 1]} : vector<8x384xf32> to vector<8x256xf32>
    %11 = tpu.concatenate %2, %3, %4, %5, %6, %7, %8, %9, %10 in 0 : vector<8x256xf32>, vector<8x256xf32>, vector<8x256xf32>, vector<8x256xf32>, vector<8x256xf32>, vector<8x256xf32>, vector<8x256xf32>, vector<8x256xf32>, vector<8x256xf32> -> vector<72x256xf32>
    %c0_3 = arith.constant 0 : index
    %c0_4 = arith.constant 0 : index
    %12 = vector.load %arg3[%c0_3, %c0_4] : memref<16x72xf32, #tpu.memory_space<vmem>>, vector<16x72xf32>
    %cst = arith.constant dense<0.000000e+00> : vector<16x256xf32>
    %13 = tpu.matmul %12, %11, %cst {dimension_numbers = #tpu.dot_dimension_numbers<[1], [0], [0], [1], [0, 0, 1, 1], [], []>} : vector<16x72xf32>, vector<72x256xf32>, vector<16x256xf32> -> vector<16x256xf32>
    %c0_5 = arith.constant 0 : index
    %c0_6 = arith.constant 0 : index
    %14 = vector.load %arg4[%c0_5, %c0_6] : memref<16x1xf32, #tpu.memory_space<vmem>>, vector<16x1xf32>
    %15 = vector.broadcast %14 : vector<16x1xf32> to vector<16x256xf32>
    %16 = arith.addf %13, %15 : vector<16x256xf32>
    %cst_7 = arith.constant 0.000000e+00 : f32
    %17 = vector.broadcast %cst_7 : f32 to vector<16x256xf32>
    %18 = arith.maximumf %16, %17 : vector<16x256xf32>
    %c0_8 = arith.constant 0 : index
    %c0_9 = arith.constant 0 : index
    %19 = vector.load %arg8[%c0_8, %c0_9] : memref<16x256xf32, #tpu.memory_space<vmem>>, vector<16x256xf32>
    tpu.vector_store %arg8[%c0_8, %c0_9], %18 {strides = array<i32>} : memref<16x256xf32, #tpu.memory_space<vmem>>, vector<16x256xf32>,
    %c0_10 = arith.constant 0 : index
    %c0_11 = arith.constant 0 : index
    %20 = vector.load %arg8[%c0_10, %c0_11] : memref<16x256xf32, #tpu.memory_space<vmem>>, vector<16x256xf32>
    %21 = vector.extract_strided_slice %20 {offsets = [0, 0], sizes = [16, 128], strides = [1, 1]} : vector<16x256xf32> to vector<16x128xf32>
    %22 = vector.extract_strided_slice %20 {offsets = [0, 1], sizes = [16, 128], strides = [1, 1]} : vector<16x256xf32> to vector<16x128xf32>
    %23 = vector.extract_strided_slice %20 {offsets = [0, 2], sizes = [16, 128], strides = [1, 1]} : vector<16x256xf32> to vector<16x128xf32>
    %24 = vector.extract_strided_slice %20 {offsets = [0, 16], sizes = [16, 128], strides = [1, 1]} : vector<16x256xf32> to vector<16x128xf32>
    %25 = vector.extract_strided_slice %20 {offsets = [0, 17], sizes = [16, 128], strides = [1, 1]} : vector<16x256xf32> to vector<16x128xf32>
    %26 = vector.extract_strided_slice %20 {offsets = [0, 18], sizes = [16, 128], strides = [1, 1]} : vector<16x256xf32> to vector<16x128xf32>
    %27 = vector.extract_strided_slice %20 {offsets = [0, 32], sizes = [16, 128], strides = [1, 1]} : vector<16x256xf32> to vector<16x128xf32>
    %28 = vector.extract_strided_slice %20 {offsets = [0, 33], sizes = [16, 128], strides = [1, 1]} : vector<16x256xf32> to vector<16x128xf32>
    %29 = vector.extract_strided_slice %20 {offsets = [0, 34], sizes = [16, 128], strides = [1, 1]} : vector<16x256xf32> to vector<16x128xf32>
    %30 = tpu.concatenate %21, %22, %23, %24, %25, %26, %27, %28, %29 in 0 : vector<16x128xf32>, vector<16x128xf32>, vector<16x128xf32>, vector<16x128xf32>, vector<16x128xf32>, vector<16x128xf32>, vector<16x128xf32>, vector<16x128xf32>, vector<16x128xf32> -> vector<144x128xf32>
    %c0_12 = arith.constant 0 : index
    %c0_13 = arith.constant 0 : index
    %31 = vector.load %arg5[%c0_12, %c0_13] : memref<32x144xf32, #tpu.memory_space<vmem>>, vector<32x144xf32>
    %cst_14 = arith.constant dense<0.000000e+00> : vector<32x128xf32>
    %32 = tpu.matmul %31, %30, %cst_14 {dimension_numbers = #tpu.dot_dimension_numbers<[1], [0], [0], [1], [0, 0, 1, 1], [], []>} : vector<32x144xf32>, vector<144x128xf32>, vector<32x128xf32> -> vector<32x128xf32>
    %c0_15 = arith.constant 0 : index
    %c0_16 = arith.constant 0 : index
    %33 = vector.load %arg6[%c0_15, %c0_16] : memref<32x1xf32, #tpu.memory_space<vmem>>, vector<32x1xf32>
    %34 = vector.broadcast %33 : vector<32x1xf32> to vector<32x128xf32>
    %35 = arith.addf %32, %34 : vector<32x128xf32>
    %cst_17 = arith.constant 0.000000e+00 : f32
    %36 = vector.broadcast %cst_17 : f32 to vector<32x128xf32>
    %37 = arith.maximumf %35, %36 : vector<32x128xf32>
    %c0_18 = arith.constant 0 : index
    %c0_19 = arith.constant 0 : index
    %c0_20 = arith.constant 0 : index
    %c0_21 = arith.constant 0 : index
    %38 = vector.load %arg7[%c0_18, %c0_19, %c0_20, %c0_21] : memref<1x1x32x128xf32, #tpu.memory_space<vmem>>, vector<1x1x32x128xf32>
    %39 = vector.shape_cast %38 : vector<1x1x32x128xf32> to vector<32x128xf32>
    %40 = vector.shape_cast %37 : vector<32x128xf32> to vector<1x1x32x128xf32>
    tpu.vector_store %arg7[%c0_18, %c0_19, %c0_20, %c0_21], %40 {strides = array<i32>} : memref<1x1x32x128xf32, #tpu.memory_space<vmem>>, vector<1x1x32x128xf32>,
    return
  }
  func.func @transform_0(%arg0: i32, %arg1: i32) -> (i32, i32, i32, i32) {
    %c0_i32 = arith.constant 0 : i32
    %c0_i32_0 = arith.constant 0 : i32
    %c0_i32_1 = arith.constant 0 : i32
    return %arg0, %arg1, %c0_i32, %c0_i32_0 : i32, i32, i32, i32
  }
  func.func @transform_1(%arg0: i32, %arg1: i32) -> (i32, i32) {
    %c0_i32 = arith.constant 0 : i32
    %c0_i32_0 = arith.constant 0 : i32
    %c0_i32_1 = arith.constant 0 : i32
    return %c0_i32, %c0_i32_0 : i32, i32
  }
  func.func @transform_2(%arg0: i32, %arg1: i32) -> (i32, i32) {
    %c0_i32 = arith.constant 0 : i32
    %c0_i32_0 = arith.constant 0 : i32
    %c0_i32_1 = arith.constant 0 : i32
    return %c0_i32, %c0_i32_0 : i32, i32
  }
  func.func @transform_3(%arg0: i32, %arg1: i32) -> (i32, i32) {
    %c0_i32 = arith.constant 0 : i32
    %c0_i32_0 = arith.constant 0 : i32
    %c0_i32_1 = arith.constant 0 : i32
    return %c0_i32, %c0_i32_0 : i32, i32
  }
  func.func @transform_4(%arg0: i32, %arg1: i32) -> (i32, i32) {
    %c0_i32 = arith.constant 0 : i32
    %c0_i32_0 = arith.constant 0 : i32
    %c0_i32_1 = arith.constant 0 : i32
    return %c0_i32, %c0_i32_0 : i32, i32
  }
  func.func @transform_5(%arg0: i32, %arg1: i32) -> (i32, i32, i32, i32) {
    %c0_i32 = arith.constant 0 : i32
    %c0_i32_0 = arith.constant 0 : i32
    %c0_i32_1 = arith.constant 0 : i32
    return %arg0, %arg1, %c0_i32, %c0_i32_0 : i32, i32, i32, i32
  }
}

module attributes {stable_mosaic.version = 11 : i64} {
  func.func @kernel(%arg0: i32, %arg1: i32, %arg2: memref<2x8192xf32, #tpu.memory_space<vmem>>, %arg3: memref<8x8192xf32, #tpu.memory_space<vmem>>, %arg4: memref<1x8xf32, #tpu.memory_space<vmem>>, %arg5: memref<2x8xf32, #tpu.memory_space<vmem>>, %arg6: memref<2x8xf32, #tpu.memory_space<vmem>>) attributes {dimension_semantics = [#tpu.dimension_semantics<parallel>, #tpu.dimension_semantics<arbitrary>], iteration_bounds = array<i64: 1, 1>, scalar_prefetch = 0 : i64, scratch_operands = 1 : i64, tpu.core_type = #tpu.core_type<tc>, window_params = [{transform_indices = @transform_0, window_bounds = array<i64: 2, 8192>}, {transform_indices = @transform_1, window_bounds = array<i64: 8, 8192>}, {pipeline_mode = #tpu.pipeline_mode<synchronous>, transform_indices = @transform_2, window_bounds = array<i64: 1, 8>}, {transform_indices = @transform_3, window_bounds = array<i64: 2, 8>}]} {
    %c0_i32 = arith.constant 0 : i32
    %0 = arith.cmpi eq, %arg1, %c0_i32 : i32
    %1 = arith.extui %0 : i1 to i32
    %c0_i32_0 = arith.constant 0 : i32
    %2 = arith.cmpi ne, %1, %c0_i32_0 : i32
    scf.if %2 {
      %cst_10 = arith.constant 0.000000e+00 : f32
      %12 = vector.broadcast %cst_10 : f32 to vector<2x8xf32>
      %c0_11 = arith.constant 0 : index
      %c0_12 = arith.constant 0 : index
      %13 = vector.load %arg6[%c0_11, %c0_12] : memref<2x8xf32, #tpu.memory_space<vmem>>, vector<2x8xf32>
      tpu.vector_store %arg6[%c0_11, %c0_12], %12 {strides = array<i32>} : memref<2x8xf32, #tpu.memory_space<vmem>>, vector<2x8xf32>,
    } else {
    }
    %c0 = arith.constant 0 : index
    %c0_1 = arith.constant 0 : index
    %3 = vector.load %arg6[%c0, %c0_1] : memref<2x8xf32, #tpu.memory_space<vmem>>, vector<2x8xf32>
    %c0_2 = arith.constant 0 : index
    %c0_3 = arith.constant 0 : index
    %4 = vector.load %arg2[%c0_2, %c0_3] : memref<2x8192xf32, #tpu.memory_space<vmem>>, vector<2x8192xf32>
    %c0_4 = arith.constant 0 : index
    %c0_5 = arith.constant 0 : index
    %5 = vector.load %arg3[%c0_4, %c0_5] : memref<8x8192xf32, #tpu.memory_space<vmem>>, vector<8x8192xf32>
    %cst = arith.constant dense<0.000000e+00> : vector<2x8xf32>
    %6 = tpu.matmul %4, %5, %cst {dimension_numbers = #tpu.dot_dimension_numbers<[1], [1], [0], [0], [0, 0, 1, 0], [], []>} : vector<2x8192xf32>, vector<8x8192xf32>, vector<2x8xf32> -> vector<2x8xf32>
    %7 = arith.addf %3, %6 : vector<2x8xf32>
    %c0_6 = arith.constant 0 : index
    %c0_7 = arith.constant 0 : index
    %8 = vector.load %arg6[%c0_6, %c0_7] : memref<2x8xf32, #tpu.memory_space<vmem>>, vector<2x8xf32>
    tpu.vector_store %arg6[%c0_6, %c0_7], %7 {strides = array<i32>} : memref<2x8xf32, #tpu.memory_space<vmem>>, vector<2x8xf32>,
    %c0_i32_8 = arith.constant 0 : i32
    %9 = arith.cmpi eq, %arg1, %c0_i32_8 : i32
    %10 = arith.extui %9 : i1 to i32
    %c0_i32_9 = arith.constant 0 : i32
    %11 = arith.cmpi ne, %10, %c0_i32_9 : i32
    scf.if %11 {
      %c0_10 = arith.constant 0 : index
      %c0_11 = arith.constant 0 : index
      %12 = vector.load %arg6[%c0_10, %c0_11] : memref<2x8xf32, #tpu.memory_space<vmem>>, vector<2x8xf32>
      %c0_12 = arith.constant 0 : index
      %c0_13 = arith.constant 0 : index
      %13 = vector.load %arg4[%c0_12, %c0_13] : memref<1x8xf32, #tpu.memory_space<vmem>>, vector<1x8xf32>
      %14 = vector.broadcast %13 : vector<1x8xf32> to vector<2x8xf32>
      %15 = arith.addf %12, %14 : vector<2x8xf32>
      %c0_14 = arith.constant 0 : index
      %c0_15 = arith.constant 0 : index
      %16 = vector.load %arg5[%c0_14, %c0_15] : memref<2x8xf32, #tpu.memory_space<vmem>>, vector<2x8xf32>
      tpu.vector_store %arg5[%c0_14, %c0_15], %15 {strides = array<i32>} : memref<2x8xf32, #tpu.memory_space<vmem>>, vector<2x8xf32>,
    } else {
    }
    return
  }
  func.func @transform_0(%arg0: i32, %arg1: i32) -> (i32, i32) {
    %c0_i32 = arith.constant 0 : i32
    return %arg0, %arg1 : i32, i32
  }
  func.func @transform_1(%arg0: i32, %arg1: i32) -> (i32, i32) {
    %c0_i32 = arith.constant 0 : i32
    %c0_i32_0 = arith.constant 0 : i32
    return %c0_i32, %arg1 : i32, i32
  }
  func.func @transform_2(%arg0: i32, %arg1: i32) -> (i32, i32) {
    %c0_i32 = arith.constant 0 : i32
    %c0_i32_0 = arith.constant 0 : i32
    %c0_i32_1 = arith.constant 0 : i32
    return %c0_i32, %c0_i32_0 : i32, i32
  }
  func.func @transform_3(%arg0: i32, %arg1: i32) -> (i32, i32) {
    %c0_i32 = arith.constant 0 : i32
    %c0_i32_0 = arith.constant 0 : i32
    return %arg0, %c0_i32 : i32, i32
  }
}

</mosaic_0001>

<bundles_post_ra>
// kernel: cnn_model_forward.2
= control target key start
LH: loop header
LB: loop body
LE: loop exit
PB: predicated region body
PF: predicated region fallthrough
CT: control target
= control target key end

     0   :  { %s1109_s18 = smov 0   ;;  %s1111_s19 = smov 0   ;;  %s1296_s0 = inlined_call_operand.vmem [shape: f32[2,2,8,384], index: 0, kind: input, shape index: {}]   ;;  %s1297_s1 = inlined_call_operand.vmem [shape: f32[16,72], index: 1, kind: input, shape index: {}]   ;;  %s1298_s2 = inlined_call_operand.vmem [shape: f32[16,1], index: 2, kind: input, shape index: {}]   ;;  %s1299_s3 = inlined_call_operand.vmem [shape: f32[32,144], index: 3, kind: input, shape index: {}]   ;;  %s1300_s4 = inlined_call_operand.vmem [shape: f32[32,1], index: 4, kind: input, shape index: {}]   ;;  %s1301_s5 = inlined_call_operand.vmem [shape: f32[2,2,32,128], index: 5, kind: output, shape index: {}]  }
   0x1   :  { %s1113_s20 = smov 0   ;;  %s1115_s21 = smov 0  }
   0x2   :  { %s1117_s22 = smov 0  }
   0x3 LB: > { %s24_s23 = sadd.s32 1, %s1058_s20  ;;  %s27_s24 = sadd.s32 1, %s1062_s21  ;;  %s1066_s22 = sphi %s1117_s22, %s15_s22   ;;  %s1062_s21 = sphi %s1115_s21, %s1305_s21   ;;  %s1058_s20 = sphi %s1113_s20, %s1304_s20   ;;  %s1054_s19 = sphi %s1111_s19, %s1303_s19   ;;  %s1050_s18 = sphi %s1109_s18, %s1302_s18  }
   0x4   : > { %p25_p0 = scmp.ge.s32.totalorder %s24_s23, 2  ;;  %p802_p1 = scmp.ge.s32.totalorder %s1066_s22, 1 }
   0x5   : > { %p207_p2 = scmp.lt.s32.totalorder %s1066_s22, 5 }
   0x6   : > { %s1307_s23 = smov (%p25_p0, %s24_s23), 0  ;;  %s1309_s24 = smov (!%p25_p0, %s27_s24), %s1062_s21 }
   0x7   : > { %p208_p3 = pnand %p802_p1, %p207_p2  ;;  %p29_p4 = scmp.ge.s32.totalorder %s1309_s24, 2 }
   0x8   : > { %p243_p5 = scmp.lt.s32.totalorder (!%p208_p3), %s1054_s19, 1  ;;  %p245_p6 = scmp.lt.s32.totalorder (!%p208_p3), %s1050_s18, 1  ;;  %v1075_v4 = vmov (!%p208_p3), 0.0   ;;  %v1076_v5 = vmov (!%p208_p3), 0   ;;  %v357_v6 = vld [vmem:[%s1298_s2] sm:$0xff] (!%p208_p3)  ;;  %v358_v7 = vld [vmem:[%s1298_s2 + $0x8] sm:$0xff] (!%p208_p3) }
   0x9   : > { %s1311_s24 = smov (%p29_p4, %s1309_s24), 0  ;;  %211 = sbr.rel (%p208_p3) target bundleno = 778 (0x30a), region = 40 }
   0xa   : > { %s1068_s7 = smov (!%p208_p3), 126   ;;  %s1069_s8 = smov (!%p208_p3), 127   ;;  %440 = vmatprep.mubr.f32.mxu0 (!%p208_p3), %v1075_v4  ;;  %946 = vset.pattern.permute.xlu1 (!%p208_p3), %v1076_v5  ;;  %vm273_vm0 = vcmask (!%p208_p3), 1039360   ;;  %vm295_vm1 = vcmask (!%p208_p3), 916480   ;;  %vm284_vm2 = vcmask (!%p208_p3), 1031168   ;;  %vm317_vm3 = vcmask (!%p208_p3), 900096  }
   0xb   : > { %s1070_s9 = smov (!%p208_p3), 112   ;;  %s1071_s10 = smov (!%p208_p3), 110   ;;  %947 = vset.pattern.permute.xlu0 (!%p208_p3), %v1076_v5  ;;  %vm306_vm4 = vcmask (!%p208_p3), 908288   ;;  %vm339_vm5 = vcmask (!%p208_p3), 777216   ;;  %vm328_vm6 = vcmask (!%p208_p3), 785408   ;;  %vm350_vm7 = vcmask (!%p208_p3), 769024  }
   0xc   : > { %s1072_s11 = smov (!%p208_p3), 111   ;;  %s1073_s12 = smov (!%p208_p3), 95   ;;  %v355_v62 = vld [vmem:[%s1297_s1] sm:$0xff] (!%p208_p3)  ;;  %vm369_vm8 = vcmask (!%p208_p3), 588800   ;;  %vm597_vm9 = vcmask (!%p208_p3), 130048  }
   0xd   : > { %s1074_s13 = smov (!%p208_p3), 96   ;;  %s1077_s14 = smov (!%p208_p3), 94  }
  0x10   : > { %s1313_s19 = smov (!%p243_p5, %s1054_s19), 1  ;;  %s1315_s18 = smov (!%p245_p6, %s1050_s18), 1 }
  0x11   : > { %s859_s25 = smul.u32 6, %s1313_s19 }
  0x12   : > { %s858_s26 = smul.u32 3, %s1315_s18 }
  0x14   : > { %s249_s27 = sadd.s32 %s859_s25, %s858_s26 }
  0x15   : > { %s803_s28 = sshll.u32 %s249_s27, 3 }
  0x16   : > { %s251_s6 = scalar_lea.vmem %s1296_s0, %s803_s28 }
  0x17   : > { %v262_v0 = vld [vmem:[%s251_s6 + $0x8] sm:$0xff]  ;;  %v263_v1 = vld [vmem:[%s251_s6 + $0x10] sm:$0xff]  ;;  %v261_v3 = vld [vmem:[%s251_s6] sm:$0xff] }
  0x18   : > { %v916_v2 = vpack.i.bf16 %v263_v1, %v262_v0 }
  0x1a   : > { %917 = vrot.lane.b32.xlu1 %v916_v2, %s1068_s7  ;;  %912 = vrot.lane.b32.xlu0 %v916_v2, %s1069_s8 }
  0x1e   : > { %922 = vrot.lane.b32.xlu1 %v916_v2, %s1070_s9  ;;  %267 = vrot.lane.b32.xlu0 %v261_v3, %s1069_s8 }
  0x22   : > { %289 = vrot.lane.b32.xlu1 %v261_v3, %s1070_s9  ;;  %278 = vrot.lane.b32.xlu0 %v261_v3, %s1068_s7 }
  0x26   : > { %932 = vrot.lane.b32.xlu1 %v916_v2, %s1071_s10  ;;  %927 = vrot.lane.b32.xlu0 %v916_v2, %s1072_s11 }
  0x2a   : > { %311 = vrot.lane.b32.xlu1 %v261_v3, %s1071_s10  ;;  %300 = vrot.lane.b32.xlu0 %v261_v3, %s1072_s11 }
  0x2e   : > { %942 = vrot.lane.b32.xlu1 %v916_v2, %s1073_s12  ;;  %937 = vrot.lane.b32.xlu0 %v916_v2, %s1074_s13 }
  0x32   : > { %333 = vrot.lane.b32.xlu1 %v261_v3, %s1073_s12  ;;  %322 = vrot.lane.b32.xlu0 %v261_v3, %s1074_s13 }
  0x36   : > { %348 = vrot.lane.b32.xlu1 %v263_v1, %s1077_s14  ;;  %346 = vrot.lane.b32.xlu0 %v262_v0, %s1077_s14  ;;  %v1078_v1 = vmov 0.0|0.0  }
  0x37   : > { %831 = vmatprep.subr.bf16.mxu1 %v1078_v1 }
  0x3a   : > { %344 = vrot.lane.b32.xlu0 %v261_v3, %s1077_s14  ;;  %361 = vperm.xlu1 %946, %v357_v6  }
  0x3e   : > { %366 = vperm.xlu0 %947, %v358_v7  }
  0x8c   : > { %v918_v8 = vpop.permute.xlu1 %917  ;;  %v913_v9 = vpop.permute.xlu0 %912 }
  0x8d   : > { %v915_v10 = vunpack.i.h.bf16 %v913_v9  ;;  %v914_v11 = vunpack.i.l.bf16 %v913_v9  ;;  %v920_v12 = vunpack.i.h.bf16 %v918_v8  ;;  %v919_v13 = vunpack.i.l.bf16 %v918_v8 }
  0x8f   : > { %v275_v14 = vsel %vm273_vm0, %v914_v11, %v915_v10  ;;  %v286_v22 = vsel %vm284_vm2, %v919_v13, %v920_v12 }
  0x90   : > { %v923_v15 = vpop.permute.xlu1 %922  ;;  %v268_v16 = vpop.permute.xlu0 %267  ;;  %v815_v17 = vpack.c.bf16 %v275_v14, %v262_v0  ;;  %v356_v0 = vld [vmem:[%s1297_s1 + $0x8] sm:$0xff] }
  0x91   : > { %v925_v18 = vunpack.i.h.bf16 %v923_v15  ;;  %v924_v19 = vunpack.i.l.bf16 %v923_v15  ;;  %v274_v20 = vsel %vm273_vm0, %v268_v16, %v914_v11 }
  0x92   : > { %816 = vmatprep.subr.bf16.mxu0 %v815_v17  ;;  %v817_v21 = vpack.c.bf16 %v274_v20, %v261_v3  ;;  %v573_v20 = vld [vmem:[%s1300_s4] sm:$0xff] }
  0x93   : > { %v297_v23 = vsel %vm295_vm1, %v924_v19, %v925_v18 }
  0x94   : > { %v290_v24 = vpop.permute.xlu1 %289  ;;  %818 = vmatpush1.bf16.msra.mxu0 %v817_v21  ;;  %v279_v25 = vpop.permute.xlu0 %278  ;;  %v819_v26 = vpack.c.bf16 %v297_v23, %v286_v22  ;;  %v575_v21 = vld [vmem:[%s1300_s4 + $0x10] sm:$0xff]  ;;  %v574_v22 = vld [vmem:[%s1300_s4 + $0x8] sm:$0xff]  ;;  %v576_v23 = vld [vmem:[%s1300_s4 + $0x18] sm:$0xff] }
  0x95   : > { %v296_v27 = vsel %vm295_vm1, %v290_v24, %v924_v19  ;;  %v285_v28 = vsel %vm284_vm2, %v279_v25, %v919_v13  ;;  %v566_v19 = vld [vmem:[%s1299_s3 + $0x8] sm:$0xff] }
  0x96   : > { %v821_v29 = vpack.c.bf16 %v296_v27, %v285_v28  ;;  %820 = vmatprep.subr.bf16.mxu0 %v819_v26  ;;  %809 = vmatprep.mubr.msk.f32.mxu1 %vm597_vm9, %v566_v19 }
  0x98   : > { %v933_v30 = vpop.permute.xlu1 %932  ;;  %822 = vmatpush1.bf16.msra.mxu0 %v821_v29  ;;  %v928_v31 = vpop.permute.xlu0 %927 }
  0x99   : > { %v935_v32 = vunpack.i.h.bf16 %v933_v30  ;;  %v934_v33 = vunpack.i.l.bf16 %v933_v30  ;;  %v930_v34 = vunpack.i.h.bf16 %v928_v31  ;;  %v929_v35 = vunpack.i.l.bf16 %v928_v31 }
  0x9b   : > { %v308_v36 = vsel %vm306_vm4, %v929_v35, %v930_v34  ;;  %v319_v37 = vsel %vm317_vm3, %v934_v33, %v935_v32 }
  0x9c   : > { %v312_v38 = vpop.permute.xlu1 %311  ;;  %v301_v39 = vpop.permute.xlu0 %300  ;;  %v823_v40 = vpack.c.bf16 %v319_v37, %v308_v36 }
  0x9d   : > { %v318_v41 = vsel %vm317_vm3, %v312_v38, %v934_v33  ;;  %v307_v42 = vsel %vm306_vm4, %v301_v39, %v929_v35 }
  0x9e   : > { %v825_v43 = vpack.c.bf16 %v318_v41, %v307_v42  ;;  %824 = vmatprep.subr.bf16.mxu0 %v823_v40 }
  0xa0   : > { %v943_v44 = vpop.permute.xlu1 %942  ;;  %v938_v45 = vpop.permute.xlu0 %937  ;;  %826 = vmatpush1.bf16.msra.mxu0 %v825_v43 }
  0xa1   : > { %v945_v46 = vunpack.i.h.bf16 %v943_v44  ;;  %v944_v47 = vunpack.i.l.bf16 %v943_v44  ;;  %v940_v48 = vunpack.i.h.bf16 %v938_v45  ;;  %v939_v49 = vunpack.i.l.bf16 %v938_v45 }
  0xa3   : > { %v330_v50 = vsel %vm328_vm6, %v939_v49, %v940_v48  ;;  %v341_v51 = vsel %vm339_vm5, %v944_v47, %v945_v46 }
  0xa4   : > { %v334_v52 = vpop.permute.xlu1 %333  ;;  %v323_v53 = vpop.permute.xlu0 %322  ;;  %v827_v54 = vpack.c.bf16 %v341_v51, %v330_v50 }
  0xa5   : > { %v340_v55 = vsel %vm339_vm5, %v334_v52, %v944_v47  ;;  %v329_v56 = vsel %vm328_vm6, %v323_v53, %v939_v49 }
  0xa6   : > { %v829_v57 = vpack.c.bf16 %v340_v55, %v329_v56  ;;  %828 = vmatprep.subr.bf16.mxu0 %v827_v54 }
  0xa8   : > { %v349_v58 = vpop.permute.xlu1 %348  ;;  %v347_v59 = vpop.permute.xlu0 %346  ;;  %830 = vmatpush1.bf16.msra.mxu0 %v829_v57 }
  0xa9   : > { %v352_v60 = vsel %vm350_vm7, %v347_v59, %v349_v58 }
  0xaa   : > { %392 = vmatprep.subr.mxu0 %v352_v60 }
  0xac   : > { %v345_v61 = vpop.permute.xlu0 %344 }
  0xad   : > { %v351_v63 = vsel %vm350_vm7, %v345_v61, %v347_v59 }
  0xae   : > { %393 = vmatpush1.msra.mxu0 %v351_v63 }
  0xaf   : > { %807 = vmatmul.mubr.msk.f32.vlgmr.msra.gmra.mrb[0].mxu0 %vm369_vm8, %v355_v62 }
  0xb0   : > { %446 = vmatprep.mubr.f32.mxu0 %v1075_v4 }
  0xb3   : > { %808 = vmatmul.mubr.msk.f32.gmra.mrb[2].mxu0 %vm369_vm8, %v356_v0 }
  0xb9   : > { %v362_v2 = vpop.permute.xlu1 %361 }
  0xbd   : > { %v367_v8 = vpop.permute.xlu0 %366 }
 0x182   : > { %v442_v3 = vpop.f32.mrb[0].mxu0 }
 0x183   : > { %v443_v5 = vadd.f32 %v442_v3, %v362_v2  ;;  %v444_v6 = vpop.f32.mrb[1].mxu0 }
 0x184   : > { %v445_v7 = vadd.f32 %v444_v6, %v362_v2 }
 0x185   : > { %v453_v9 = vmax.f32 %v443_v5, 0.0 }
 0x186   : > { %v454_v10 = vmax.f32 %v445_v7, 0.0  ;;  %v448_v11 = vpop.f32.mrb[2].mxu0 }
 0x187   : > { %v449_v12 = vadd.f32 %v448_v11, %v367_v8  ;;  %v450_v13 = vpop.f32.mrb[3].mxu0 }
 0x188   : > { %v451_v4 = vadd.f32 %v450_v13, %v367_v8  ;;  %v953_v14 = vpack.i.bf16 %v454_v10, %v453_v9 }
 0x189   : > { %v455_v15 = vmax.f32 %v449_v12, 0.0 }
 0x18a   : > { %v456_v16 = vmax.f32 %v451_v4, 0.0  ;;  %954 = vrot.lane.b32.xlu0 %v953_v14, %s1068_s7  ;;  %949 = vrot.lane.b32.xlu1 %v953_v14, %s1069_s8 }
 0x18b   : > { %v832_v17 = vpack.c.bf16 %v455_v15, %v453_v9 }
 0x18c   : > { %v988_v18 = vpack.i.bf16 %v456_v16, %v455_v15 }
 0x18d   : > { %833 = vmatpush1.bf16.msra.mxu1 %v832_v17 }
 0x18e   : > { %959 = vrot.lane.b32.xlu0 %v953_v14, %s1070_s9  ;;  %989 = vrot.lane.b32.xlu1 %v988_v18, %s1069_s8 }
 0x18f   : > { %834 = vmatprep.subr.bf16.mxu1 %v1078_v1 }
 0x192   : > { %964 = vrot.lane.b32.xlu0 %v953_v14, %s1072_s11  ;;  %994 = vrot.lane.b32.xlu1 %v988_v18, %s1068_s7 }
 0x196   : > { %969 = vrot.lane.b32.xlu0 %v953_v14, %s1071_s10  ;;  %999 = vrot.lane.b32.xlu1 %v988_v18, %s1070_s9 }
 0x19a   : > { %974 = vrot.lane.b32.xlu0 %v953_v14, %s1074_s13  ;;  %1004 = vrot.lane.b32.xlu1 %v988_v18, %s1072_s11  ;;  %s804_s11 = sshll.u32 %s1315_s18, 2 }
 0x19e   : > { %979 = vrot.lane.b32.xlu0 %v953_v14, %s1073_s12  ;;  %1009 = vrot.lane.b32.xlu1 %v988_v18, %s1071_s10 }
 0x1a2   : > { %984 = vrot.lane.b32.xlu0 %v953_v14, %s1077_s14  ;;  %1014 = vrot.lane.b32.xlu1 %v988_v18, %s1074_s13  ;;  %s805_s13 = sshll.u32 %s1313_s19, 3 }
 0x1a3   : > { %s258_s15 = sadd.s32 %s805_s13, %s804_s11 }
 0x1a4   : > { %s806_s16 = sshll.u32 %s258_s15, 3 }
 0x1a5   : > { %s260_s17 = scalar_lea.vmem %s1301_s5, %s806_s16 }
 0x1a6   : > { %579 = vperm.xlu0 %947, %v573_v20   ;;  %1019 = vrot.lane.b32.xlu1 %v988_v18, %s1073_s12 }
 0x1aa   : > { %589 = vperm.xlu0 %947, %v575_v21   ;;  %1024 = vrot.lane.b32.xlu1 %v988_v18, %s1077_s14 }
 0x1ae   : > { %584 = vperm.xlu1 %946, %v574_v22  }
 0x1b2   : > { %594 = vperm.xlu1 %946, %v576_v23  }
 0x1fc   : > { %v955_v24 = vpop.permute.xlu0 %954  ;;  %v950_v25 = vpop.permute.xlu1 %949 }
 0x1fd   : > { %v952_v26 = vunpack.i.h.bf16 %v950_v25  ;;  %v951_v27 = vunpack.i.l.bf16 %v950_v25  ;;  %v957_v32 = vunpack.i.h.bf16 %v955_v24  ;;  %v956_v33 = vunpack.i.l.bf16 %v955_v24 }
 0x1ff   : > { %v477_v34 = vsel %vm273_vm0, %v951_v27, %v952_v26  ;;  %v489_v43 = vsel %vm284_vm2, %v956_v33, %v957_v32  ;;  %v565_v33 = vld [vmem:[%s1299_s3] sm:$0xff] }
 0x200   : > { %v960_v28 = vpop.permute.xlu0 %959  ;;  %v990_v29 = vpop.permute.xlu1 %989 }
 0x201   : > { %v992_v30 = vunpack.i.h.bf16 %v990_v29  ;;  %v991_v31 = vunpack.i.l.bf16 %v990_v29  ;;  %v962_v41 = vunpack.i.h.bf16 %v960_v28  ;;  %v961_v42 = vunpack.i.l.bf16 %v960_v28 }
 0x203   : > { %v478_v35 = vsel %vm273_vm0, %v991_v31, %v992_v30  ;;  %v501_v52 = vsel %vm295_vm1, %v961_v42, %v962_v41 }
 0x204   : > { %v965_v36 = vpop.permute.xlu0 %964  ;;  %v995_v37 = vpop.permute.xlu1 %994  ;;  %v835_v38 = vpack.c.bf16 %v478_v35, %v477_v34  ;;  %v568_v34 = vld [vmem:[%s1299_s3 + $0x18] sm:$0xff]  ;;  %v570_v35 = vld [vmem:[%s1299_s3 + $0x28] sm:$0xff] }
 0x205   : > { %v997_v39 = vunpack.i.h.bf16 %v995_v37  ;;  %v996_v40 = vunpack.i.l.bf16 %v995_v37  ;;  %v967_v50 = vunpack.i.h.bf16 %v965_v36  ;;  %v966_v51 = vunpack.i.l.bf16 %v965_v36  ;;  %v569_v36 = vld [vmem:[%s1299_s3 + $0x20] sm:$0xff]  ;;  %v572_v37 = vld [vmem:[%s1299_s3 + $0x38] sm:$0xff] }
 0x206   : > { %836 = vmatpush1.bf16.msra.mxu1 %v835_v38  ;;  %v571_v38 = vld [vmem:[%s1299_s3 + $0x30] sm:$0xff] }
 0x207   : > { %837 = vmatprep.subr.bf16.mxu1 %v1078_v1  ;;  %v490_v44 = vsel %vm284_vm2, %v996_v40, %v997_v39  ;;  %v513_v61 = vsel %vm306_vm4, %v966_v51, %v967_v50 }
 0x208   : > { %v970_v45 = vpop.permute.xlu0 %969  ;;  %v1000_v46 = vpop.permute.xlu1 %999  ;;  %v838_v47 = vpack.c.bf16 %v490_v44, %v489_v43 }
 0x209   : > { %v1002_v48 = vunpack.i.h.bf16 %v1000_v46  ;;  %v1001_v49 = vunpack.i.l.bf16 %v1000_v46  ;;  %v972_v59 = vunpack.i.h.bf16 %v970_v45  ;;  %v971_v60 = vunpack.i.l.bf16 %v970_v45 }
 0x20a   : > { %839 = vmatpush1.bf16.msra.mxu1 %v838_v47 }
 0x20b   : > { %840 = vmatprep.subr.bf16.mxu1 %v1078_v1  ;;  %v502_v53 = vsel %vm295_vm1, %v1001_v49, %v1002_v48  ;;  %v525_v8 = vsel %vm317_vm3, %v971_v60, %v972_v59 }
 0x20c   : > { %v975_v54 = vpop.permute.xlu0 %974  ;;  %v1005_v55 = vpop.permute.xlu1 %1004  ;;  %v841_v56 = vpack.c.bf16 %v502_v53, %v501_v52 }
 0x20d   : > { %v1007_v57 = vunpack.i.h.bf16 %v1005_v55  ;;  %v1006_v58 = vunpack.i.l.bf16 %v1005_v55  ;;  %v977_v6 = vunpack.i.h.bf16 %v975_v54  ;;  %v976_v7 = vunpack.i.l.bf16 %v975_v54 }
 0x20e   : > { %842 = vmatpush1.bf16.msra.mxu1 %v841_v56 }
 0x20f   : > { %843 = vmatprep.subr.bf16.mxu1 %v1078_v1  ;;  %v514_v62 = vsel %vm306_vm4, %v1006_v58, %v1007_v57  ;;  %v537_v15 = vsel %vm328_vm6, %v976_v7, %v977_v6 }
 0x210   : > { %v1010_v63 = vpop.permute.xlu1 %1009  ;;  %v844_v0 = vpack.c.bf16 %v514_v62, %v513_v61  ;;  %v980_v5 = vpop.permute.xlu0 %979 }
 0x211   : > { %v1012_v2 = vunpack.i.h.bf16 %v1010_v63  ;;  %v1011_v3 = vunpack.i.l.bf16 %v1010_v63  ;;  %v982_v4 = vunpack.i.h.bf16 %v980_v5  ;;  %v981_v14 = vunpack.i.l.bf16 %v980_v5 }
 0x212   : > { %845 = vmatpush1.bf16.msra.mxu1 %v844_v0 }
 0x213   : > { %846 = vmatprep.subr.bf16.mxu1 %v1078_v1  ;;  %v526_v9 = vsel %vm317_vm3, %v1011_v3, %v1012_v2  ;;  %v549_v24 = vsel %vm339_vm5, %v981_v14, %v982_v4 }
 0x214   : > { %v1015_v10 = vpop.permute.xlu1 %1014  ;;  %v847_v11 = vpack.c.bf16 %v526_v9, %v525_v8  ;;  %v985_v17 = vpop.permute.xlu0 %984 }
 0x215   : > { %v1017_v12 = vunpack.i.h.bf16 %v1015_v10  ;;  %v1016_v13 = vunpack.i.l.bf16 %v1015_v10  ;;  %v987_v22 = vunpack.i.h.bf16 %v985_v17  ;;  %v986_v23 = vunpack.i.l.bf16 %v985_v17 }
 0x216   : > { %848 = vmatpush1.bf16.msra.mxu1 %v847_v11 }
 0x217   : > { %849 = vmatprep.subr.bf16.mxu1 %v1078_v1  ;;  %v538_v16 = vsel %vm328_vm6, %v1016_v13, %v1017_v12  ;;  %v561_v30 = vsel %vm350_vm7, %v986_v23, %v987_v22 }
 0x218   : > { %v1020_v18 = vpop.permute.xlu1 %1019  ;;  %v850_v19 = vpack.c.bf16 %v538_v16, %v537_v15 }
 0x219   : > { %v1022_v20 = vunpack.i.h.bf16 %v1020_v18  ;;  %v1021_v21 = vunpack.i.l.bf16 %v1020_v18 }
 0x21a   : > { %851 = vmatpush1.bf16.msra.mxu1 %v850_v19 }
 0x21b   : > { %852 = vmatprep.subr.bf16.mxu1 %v1078_v1  ;;  %v550_v25 = vsel %vm339_vm5, %v1021_v21, %v1022_v20 }
 0x21c   : > { %v1025_v26 = vpop.permute.xlu1 %1024  ;;  %v853_v27 = vpack.c.bf16 %v550_v25, %v549_v24 }
 0x21d   : > { %v1027_v28 = vunpack.i.h.bf16 %v1025_v26  ;;  %v1026_v29 = vunpack.i.l.bf16 %v1025_v26 }
 0x21e   : > { %854 = vmatpush1.bf16.msra.mxu1 %v853_v27 }
 0x21f   : > { %855 = vmatprep.subr.bf16.mxu1 %v1078_v1  ;;  %v562_v31 = vsel %vm350_vm7, %v1026_v29, %v1027_v28  ;;  %v567_v1 = vld [vmem:[%s1299_s3 + $0x10] sm:$0xff] }
 0x220   : > { %v856_v32 = vpack.c.bf16 %v562_v31, %v561_v30 }
 0x222   : > { %857 = vmatpush1.bf16.msra.mxu1 %v856_v32 }
 0x225   : > { %675 = vmatmul.mubr.f32.vlgmr.msra.gmra.mrb[0].mxu1 %v565_v33  ;;  %v580_v39 = vpop.permute.xlu0 %579 }
 0x226   : > { %810 = vmatprep.mubr.msk.f32.mxu1 %vm597_vm9, %v568_v34 }
 0x229   : > { %680 = vmatmul.mubr.f32.gmra.mrb[2].mxu1 %v567_v1  ;;  %v590_v49 = vpop.permute.xlu0 %589 }
 0x22a   : > { %811 = vmatprep.mubr.msk.f32.mxu1 %vm597_vm9, %v570_v35 }
 0x22d   : > { %685 = vmatmul.mubr.f32.gmra.mrb[4].mxu1 %v569_v36  ;;  %v585_v44 = vpop.permute.xlu1 %584 }
 0x22e   : > { %812 = vmatprep.mubr.msk.f32.mxu1 %vm597_vm9, %v572_v37 }
 0x231   : > { %690 = vmatmul.mubr.f32.gmra.mrb[6].mxu1 %v571_v38  ;;  %v595_v54 = vpop.permute.xlu1 %594 }
 0x2f8   : > { %v676_v40 = vpop.f32.mrb[0].mxu1 }
 0x2f9   : > { %v677_v41 = vadd.f32 %v676_v40, %v580_v39  ;;  %v678_v42 = vpop.f32.mrb[1].mxu1 }
 0x2fb   : > { %v695_v43 = vmax.f32 %v677_v41, 0.0 }
 0x2fc   : > { %v681_v45 = vpop.f32.mrb[2].mxu1 }
 0x2fd   : > { %699 = vst [vmem:[%s260_s17] sm:$0xff] %v695_v43  ;;  %v682_v46 = vadd.f32 %v681_v45, %v585_v44  ;;  %v683_v47 = vpop.f32.mrb[3].mxu1 }
 0x2ff   : > { %v696_v48 = vmax.f32 %v682_v46, 0.0 }
 0x300   : > { %v686_v50 = vpop.f32.mrb[4].mxu1 }
 0x301   : > { %700 = vst [vmem:[%s260_s17 + $0x8] sm:$0xff] %v696_v48  ;;  %v687_v51 = vadd.f32 %v686_v50, %v590_v49  ;;  %v688_v52 = vpop.f32.mrb[5].mxu1 }
 0x303   : > { %v697_v53 = vmax.f32 %v687_v51, 0.0 }
 0x304   : > { %v691_v55 = vpop.f32.mrb[6].mxu1 }
 0x305   : > { %701 = vst [vmem:[%s260_s17 + $0x10] sm:$0xff] %v697_v53  ;;  %v692_v56 = vadd.f32 %v691_v55, %v595_v54  ;;  %v693_v57 = vpop.f32.mrb[7].mxu1 }
 0x307   : > { %v698_v58 = vmax.f32 %v692_v56, 0.0 }
 0x309   : > { %702 = vst [vmem:[%s260_s17 + $0x18] sm:$0xff] %v698_v58 }
 0x30a PF: > { %s15_s22 = sadd.s32 1, %s1066_s22   ;;  %s1302_s18 = smov %s1058_s20 }
 0x30b   : > { %p12_p7 = scmp.ge.s32.totalorder %s15_s22, 6   ;;  %s1303_s19 = smov %s1062_s21 }
 0x30c   : > { %s1304_s20 = smov %s1307_s23  ;;  %s1305_s21 = smov %s1311_s24 }
 0x30d   :  { %14 = sbr.rel (!%p12_p7) target bundleno = 3 (0x3), region = 70 }

// kernel: cnn_model_forward.3
= control target key start
LH: loop header
LB: loop body
LE: loop exit
PB: predicated region body
PF: predicated region fallthrough
CT: control target
= control target key end

     0   :  { %v122_v3 = vlaneseq  ;;  %v2768_v6 = vmov 1983009808   ;;  %s3083_s0 = inlined_call_operand.vmem [shape: f32[2,8192], index: 0, kind: input, shape index: {}]   ;;  %s3084_s1 = inlined_call_operand.vmem [shape: f32[8,8192], index: 1, kind: input, shape index: {}]   ;;  %s3085_s2 = inlined_call_operand.vmem [shape: f32[1,8], index: 2, kind: input, shape index: {}]   ;;  %s3086_s3 = inlined_call_operand.hbm [shape: f32[2,8], index: 3, kind: output, shape index: {}]  }
   0x1   :  { %v39_v0 = vld [vmem:[%s3084_s1 + $0x8] sm:$0xff]  ;;  %v38_v1 = vld [vmem:[%s3084_s1] sm:$0xff]  ;;  %v41_v2 = vld [vmem:[%s3084_s1 + $0x18] sm:$0xff]  ;;  %v120_v7 = vunpack.c.l.s4 %v2768_v6 }
   0x2   :  { %454 = vmatprep.subr.mxu0 %v39_v0  ;;  %524 = vmatprep.subr.mxu1 %v41_v2  ;;  %v40_v4 = vld [vmem:[%s3084_s1 + $0x10] sm:$0xff]  ;;  %v22_v5 = vld [vmem:[%s3083_s0] sm:$0xff]  ;;  %v43_v8 = vld [vmem:[%s3084_s1 + $0x28] sm:$0xff]  ;;  %v123_v9 = vshrl.u32 %v122_v3, 7 }
   0x3   :  { %455 = vmatpush1.xpose.msra.mxu0 %v38_v1  ;;  %525 = vmatpush1.xpose.msra.mxu1 %v40_v4  ;;  %v45_v10 = vld [vmem:[%s3084_s1 + $0x38] sm:$0xff]  ;;  %v121_v11 = vunpack.c.0.s8 %v120_v7  ;;  %v118_v12 = vcombine.high %v22_v5, %v22_v5  ;;  %v23_v13 = vld [vmem:[%s3083_s0 + $0x8] sm:$0xff]  ;;  %v24_v15 = vld [vmem:[%s3083_s0 + $0x10] sm:$0xff] }
   0x4   :  { %594 = vmatprep.subr.mxu0 %v43_v8  ;;  %664 = vmatprep.subr.mxu1 %v45_v10  ;;  %v135_v14 = vcombine.high %v23_v13, %v23_v13  ;;  %v152_v17 = vcombine.high %v24_v15, %v24_v15  ;;  %v25_v22 = vld [vmem:[%s3083_s0 + $0x18] sm:$0xff]  ;;  %v42_v25 = vld [vmem:[%s3084_s1 + $0x20] sm:$0xff]  ;;  %v44_v26 = vld [vmem:[%s3084_s1 + $0x30] sm:$0xff] }
   0x5   :  { %v2818_v16 = vsub.s32 %v121_v11, %v123_v9  ;;  %v47_v29 = vld [vmem:[%s3084_s1 + $0x48] sm:$0xff]  ;;  %v169_v32 = vcombine.high %v25_v22, %v25_v22  ;;  %v49_v33 = vld [vmem:[%s3084_s1 + $0x58] sm:$0xff]  ;;  %v26_v34 = vld [vmem:[%s3083_s0 + $0x20] sm:$0xff] }
   0x6   :  { %v46_v35 = vld [vmem:[%s3084_s1 + $0x40] sm:$0xff]  ;;  %v48_v36 = vld [vmem:[%s3084_s1 + $0x50] sm:$0xff]  ;;  %v51_v39 = vld [vmem:[%s3084_s1 + $0x68] sm:$0xff]  ;;  %v186_v42 = vcombine.high %v26_v34, %v26_v34 }
   0x7   :  { %v125_v18 = vrot.slane %v22_v5, %v2818_v16  ;;  %v132_v19 = vrot.slane %v118_v12, %v2818_v16  ;;  %v142_v20 = vrot.slane %v23_v13, %v2818_v16  ;;  %v149_v21 = vrot.slane %v135_v14, %v2818_v16  ;;  %v53_v43 = vld [vmem:[%s3084_s1 + $0x78] sm:$0xff]  ;;  %v27_v44 = vld [vmem:[%s3083_s0 + $0x28] sm:$0xff]  ;;  %v50_v45 = vld [vmem:[%s3084_s1 + $0x60] sm:$0xff] }
   0x8   :  { %v159_v28 = vrot.slane %v24_v15, %v2818_v16  ;;  %v166_v31 = vrot.slane %v152_v17, %v2818_v16  ;;  %v176_v38 = vrot.slane %v25_v22, %v2818_v16  ;;  %v183_v41 = vrot.slane %v169_v32, %v2818_v16  ;;  %v52_v46 = vld [vmem:[%s3084_s1 + $0x70] sm:$0xff]  ;;  %v55_v49 = vld [vmem:[%s3084_s1 + $0x88] sm:$0xff]  ;;  %v57_v53 = vld [vmem:[%s3084_s1 + $0x98] sm:$0xff] }
   0x9   :  { %v133_v23 = vcombine.high %v125_v18, %v125_v18  ;;  %v134_v24 = vcombine.high %v132_v19, %v132_v19  ;;  %v150_v27 = vcombine.high %v142_v20, %v142_v20  ;;  %v151_v30 = vcombine.high %v149_v21, %v149_v21  ;;  %v28_v54 = vld [vmem:[%s3083_s0 + $0x30] sm:$0xff]  ;;  %v54_v55 = vld [vmem:[%s3084_s1 + $0x80] sm:$0xff]  ;;  %v59_v59 = vld [vmem:[%s3084_s1 + $0xa8] sm:$0xff] }
   0xa   :  { %v167_v37 = vcombine.high %v159_v28, %v159_v28  ;;  %v168_v40 = vcombine.high %v166_v31, %v166_v31  ;;  %v184_v47 = vcombine.high %v176_v38, %v176_v38  ;;  %v193_v48 = vrot.slane %v26_v34, %v2818_v16  ;;  %v56_v56 = vld [vmem:[%s3084_s1 + $0x90] sm:$0xff]  ;;  %v61_v63 = vld [vmem:[%s3084_s1 + $0xb8] sm:$0xff]  ;;  %v58_v1 = vld [vmem:[%s3084_s1 + $0xa0] sm:$0xff] }
   0xb   :  { %518 = vmatprep.mubr.f32.mxu0 %v133_v23  ;;  %588 = vmatprep.mubr.f32.mxu1 %v134_v24  ;;  %v185_v50 = vcombine.high %v183_v41, %v183_v41  ;;  %v200_v51 = vrot.slane %v186_v42, %v2818_v16  ;;  %v203_v52 = vcombine.high %v27_v44, %v27_v44  ;;  %v29_v0 = vld [vmem:[%s3083_s0 + $0x38] sm:$0xff]  ;;  %v60_v2 = vld [vmem:[%s3084_s1 + $0xb0] sm:$0xff] }
   0xc   :  { %519 = vmatmul.mubr.f32.vlgmr.msra.gmra.mrb[0].mxu0 %v125_v18  ;;  %589 = vmatmul.mubr.f32.vlgmr.msra.gmra.mrb[0].mxu1 %v132_v19  ;;  %v201_v57 = vcombine.high %v193_v48, %v193_v48  ;;  %v210_v58 = vrot.slane %v27_v44, %v2818_v16  ;;  %v220_v62 = vcombine.high %v28_v54, %v28_v54 }
   0xd   :  { %595 = vmatpush1.xpose.msra.mxu0 %v42_v25  ;;  %665 = vmatpush1.xpose.msra.mxu1 %v44_v26  ;;  %v202_v60 = vcombine.high %v200_v51, %v200_v51  ;;  %v217_v61 = vrot.slane %v203_v52, %v2818_v16  ;;  %v227_v4 = vrot.slane %v28_v54, %v2818_v16 }
   0xe   :  { %658 = vmatprep.mubr.f32.mxu0 %v150_v27  ;;  %734 = vmatprep.subr.mxu0 %v47_v29  ;;  %v218_v3 = vcombine.high %v210_v58, %v210_v58 }
   0xf   :  { %728 = vmatprep.mubr.f32.mxu1 %v151_v30  ;;  %804 = vmatprep.subr.mxu1 %v49_v33 }
  0x10   :  { %659 = vmatmul.mubr.f32.vlgmr.msra.gmra.mrb[2].mxu0 %v142_v20  ;;  %729 = vmatmul.mubr.f32.vlgmr.msra.gmra.mrb[2].mxu1 %v149_v21 }
  0x11   :  { %735 = vmatpush1.xpose.msra.mxu0 %v46_v35  ;;  %805 = vmatpush1.xpose.msra.mxu1 %v48_v36 }
  0x12   :  { %798 = vmatprep.mubr.f32.mxu0 %v167_v37  ;;  %874 = vmatprep.subr.mxu0 %v51_v39 }
  0x13   :  { %868 = vmatprep.mubr.f32.mxu1 %v168_v40  ;;  %944 = vmatprep.subr.mxu1 %v53_v43 }
  0x14   :  { %799 = vmatmul.mubr.f32.vlgmr.msra.gmra.mrb[4].mxu0 %v159_v28  ;;  %869 = vmatmul.mubr.f32.vlgmr.msra.gmra.mrb[4].mxu1 %v166_v31 }
  0x15   :  { %875 = vmatpush1.xpose.msra.mxu0 %v50_v45  ;;  %945 = vmatpush1.xpose.msra.mxu1 %v52_v46 }
  0x16   :  { %938 = vmatprep.mubr.f32.mxu0 %v184_v47  ;;  %1014 = vmatprep.subr.mxu0 %v55_v49 }
  0x17   :  { %1008 = vmatprep.mubr.f32.mxu1 %v185_v50  ;;  %1084 = vmatprep.subr.mxu1 %v57_v53 }
  0x18   :  { %939 = vmatmul.mubr.f32.vlgmr.msra.gmra.mrb[6].mxu0 %v176_v38  ;;  %1009 = vmatmul.mubr.f32.vlgmr.msra.gmra.mrb[6].mxu1 %v183_v41 }
  0x19   :  { %1015 = vmatpush1.xpose.msra.mxu0 %v54_v55  ;;  %1085 = vmatpush1.xpose.msra.mxu1 %v56_v56 }
  0x1a   :  { %1078 = vmatprep.mubr.f32.mxu0 %v201_v57  ;;  %1154 = vmatprep.subr.mxu0 %v59_v59 }
  0x1b   :  { %8 = vsyncpa [#allocation4], 0  ;;  %1148 = vmatprep.mubr.f32.mxu1 %v202_v60  ;;  %1224 = vmatprep.subr.mxu1 %v61_v63  ;;  %v63_v5 = vld [vmem:[%s3084_s1 + $0xc8] sm:$0xff]  ;;  %v219_v6 = vcombine.high %v217_v61, %v217_v61  ;;  %v234_v7 = vrot.slane %v220_v62, %v2818_v16  ;;  %v237_v8 = vcombine.high %v29_v0, %v29_v0  ;;  %v65_v9 = vld [vmem:[%s3084_s1 + $0xd8] sm:$0xff]  ;;  %vm19_vm0 = vcmask 58368   ;;  %s2770_s10 = smov [#allocation3]  }
  0x1c   :  { %1079 = vmatmul.mubr.f32.vlgmr.msra.gmra.mrb[8].mxu0 %v193_v48  ;;  %1149 = vmatmul.mubr.f32.vlgmr.msra.gmra.mrb[8].mxu1 %v200_v51  ;;  %v30_v10 = vld [vmem:[%s3083_s0 + $0x40] sm:$0xff]  ;;  %v64_v12 = vld [vmem:[%s3084_s1 + $0xd0] sm:$0xff]  ;;  %v235_v13 = vcombine.high %v227_v4, %v227_v4  ;;  %v244_v14 = vrot.slane %v29_v0, %v2818_v16  ;;  %v67_v15 = vld [vmem:[%s3084_s1 + $0xe8] sm:$0xff]  ;;  %s2716_s11 = sshll.u32 %s2770_s10, 4  ;;  %s2717_s11 = int_to_ptr.vmem [resolvable:$true] %s2716_s11 }
  0x1d   :  { %1155 = vmatpush1.xpose.msra.mxu0 %v58_v1  ;;  %1225 = vmatpush1.xpose.msra.mxu1 %v60_v2  ;;  %v62_v11 = vld [vmem:[%s3084_s1 + $0xc0] sm:$0xff]  ;;  %v236_v17 = vcombine.high %v234_v7, %v234_v7  ;;  %v251_v18 = vrot.slane %v237_v8, %v2818_v16  ;;  %v254_v19 = vcombine.high %v30_v10, %v30_v10  ;;  %v69_v20 = vld [vmem:[%s3084_s1 + $0xf8] sm:$0xff]  ;;  %v31_v21 = vld [vmem:[%s3083_s0 + $0x48] sm:$0xff]  ;;  %s2744_s12 = scalar_lea.vmem %s2717_s11, 32  ;;  %p2749_p1 = scmp.lt.s32.totalorder %s2717_s11, %s2717_s11 }
  0x1e   :  { %1218 = vmatprep.mubr.f32.mxu0 %v218_v3  ;;  %1294 = vmatprep.subr.mxu0 %v63_v5  ;;  %v66_v22 = vld [vmem:[%s3084_s1 + $0xe0] sm:$0xff]  ;;  %v68_v23 = vld [vmem:[%s3084_s1 + $0xf0] sm:$0xff]  ;;  %v252_v24 = vcombine.high %v244_v14, %v244_v14  ;;  %v261_v25 = vrot.slane %v30_v10, %v2818_v16  ;;  %v71_v26 = vld [vmem:[%s3084_s1 + $0x108] sm:$0xff]  ;;  %v271_v29 = vcombine.high %v31_v21, %v31_v21  ;;  %p2745_p0 = scmp.ne.s32.totalorder %s2717_s11, %s2744_s12  ;;  %p2750_p2 = scmp.lt.s32.totalorder %s2744_s12, %s2744_s12 }
  0x1f   :  { %1288 = vmatprep.mubr.f32.mxu1 %v219_v6  ;;  %1364 = vmatprep.subr.mxu1 %v65_v9  ;;  %v253_v27 = vcombine.high %v251_v18, %v251_v18  ;;  %v268_v28 = vrot.slane %v254_v19, %v2818_v16  ;;  %v73_v30 = vld [vmem:[%s3084_s1 + $0x118] sm:$0xff]  ;;  %v32_v31 = vld [vmem:[%s3083_s0 + $0x50] sm:$0xff]  ;;  %v70_v32 = vld [vmem:[%s3084_s1 + $0x100] sm:$0xff]  ;;  %v278_v35 = vrot.slane %v31_v21, %v2818_v16 }
  0x20   :  { %1219 = vmatmul.mubr.f32.vlgmr.msra.gmra.mrb[10].mxu0 %v210_v58  ;;  %1289 = vmatmul.mubr.f32.vlgmr.msra.gmra.mrb[10].mxu1 %v217_v61  ;;  %v72_v33 = vld [vmem:[%s3084_s1 + $0x110] sm:$0xff]  ;;  %v269_v34 = vcombine.high %v261_v25, %v261_v25  ;;  %v75_v36 = vld [vmem:[%s3084_s1 + $0x128] sm:$0xff]  ;;  %v285_v38 = vrot.slane %v271_v29, %v2818_v16  ;;  %v288_v39 = vcombine.high %v32_v31, %v32_v31  ;;  %v77_v40 = vld [vmem:[%s3084_s1 + $0x138] sm:$0xff]  ;;  %p2751_p3 = por %p2750_p2, %p2749_p1 }
  0x21   :  { %1295 = vmatpush1.xpose.msra.mxu0 %v62_v11  ;;  %1365 = vmatpush1.xpose.msra.mxu1 %v64_v12  ;;  %v270_v37 = vcombine.high %v268_v28, %v268_v28  ;;  %v33_v41 = vld [vmem:[%s3083_s0 + $0x58] sm:$0xff]  ;;  %v74_v42 = vld [vmem:[%s3084_s1 + $0x120] sm:$0xff]  ;;  %v76_v43 = vld [vmem:[%s3084_s1 + $0x130] sm:$0xff]  ;;  %v286_v44 = vcombine.high %v278_v35, %v278_v35  ;;  %v295_v45 = vrot.slane %v32_v31, %v2818_v16 }
  0x22   :  { %1358 = vmatprep.mubr.f32.mxu0 %v235_v13  ;;  %1434 = vmatprep.subr.mxu0 %v67_v15  ;;  %v79_v46 = vld [vmem:[%s3084_s1 + $0x148] sm:$0xff]  ;;  %v287_v47 = vcombine.high %v285_v38, %v285_v38  ;;  %v302_v48 = vrot.slane %v288_v39, %v2818_v16  ;;  %v305_v49 = vcombine.high %v33_v41, %v33_v41  ;;  %v81_v50 = vld [vmem:[%s3084_s1 + $0x158] sm:$0xff]  ;;  %v34_v51 = vld [vmem:[%s3083_s0 + $0x60] sm:$0xff]  ;;  %v2769_v39 = vmov 0.0   ;;  %p2752_p4 = pnand %p2751_p3, %p2745_p0 }
  0x23   :  { %1428 = vmatprep.mubr.f32.mxu1 %v236_v17  ;;  %1504 = vmatprep.subr.mxu1 %v69_v20  ;;  %v78_v52 = vld [vmem:[%s3084_s1 + $0x140] sm:$0xff]  ;;  %v80_v53 = vld [vmem:[%s3084_s1 + $0x150] sm:$0xff]  ;;  %v303_v54 = vcombine.high %v295_v45, %v295_v45  ;;  %v312_v55 = vrot.slane %v33_v41, %v2818_v16  ;;  %v83_v56 = vld [vmem:[%s3084_s1 + $0x168] sm:$0xff]  ;;  %v322_v59 = vcombine.high %v34_v51, %v34_v51 }
  0x24   :  { %1359 = vmatmul.mubr.f32.vlgmr.msra.gmra.mrb[12].mxu0 %v227_v4  ;;  %1429 = vmatmul.mubr.f32.vlgmr.msra.gmra.mrb[12].mxu1 %v234_v7  ;;  %v304_v57 = vcombine.high %v302_v48, %v302_v48  ;;  %v319_v58 = vrot.slane %v305_v49, %v2818_v16  ;;  %v85_v60 = vld [vmem:[%s3084_s1 + $0x178] sm:$0xff]  ;;  %v35_v61 = vld [vmem:[%s3083_s0 + $0x68] sm:$0xff]  ;;  %v82_v62 = vld [vmem:[%s3084_s1 + $0x160] sm:$0xff]  ;;  %v329_v1 = vrot.slane %v34_v51, %v2818_v16 }
  0x25   :  { %1435 = vmatpush1.xpose.msra.mxu0 %v66_v22  ;;  %1505 = vmatpush1.xpose.msra.mxu1 %v68_v23  ;;  %v84_v63 = vld [vmem:[%s3084_s1 + $0x170] sm:$0xff]  ;;  %v320_v0 = vcombine.high %v312_v55, %v312_v55  ;;  %v87_v2 = vld [vmem:[%s3084_s1 + $0x188] sm:$0xff]  ;;  %v336_v4 = vrot.slane %v322_v59, %v2818_v16  ;;  %v339_v5 = vcombine.high %v35_v61, %v35_v61  ;;  %v89_v6 = vld [vmem:[%s3084_s1 + $0x198] sm:$0xff] }
  0x26   :  { %1498 = vmatprep.mubr.f32.mxu0 %v252_v24  ;;  %1574 = vmatprep.subr.mxu0 %v71_v26  ;;  %v321_v3 = vcombine.high %v319_v58, %v319_v58  ;;  %v36_v7 = vld [vmem:[%s3083_s0 + $0x70] sm:$0xff]  ;;  %v86_v8 = vld [vmem:[%s3084_s1 + $0x180] sm:$0xff]  ;;  %v337_v10 = vcombine.high %v329_v1, %v329_v1  ;;  %v346_v11 = vrot.slane %v35_v61, %v2818_v16  ;;  %v91_v12 = vld [vmem:[%s3084_s1 + $0x1a8] sm:$0xff] }
  0x27   :  { %1568 = vmatprep.mubr.f32.mxu1 %v253_v27  ;;  %1644 = vmatprep.subr.mxu1 %v73_v30  ;;  %v88_v9 = vld [vmem:[%s3084_s1 + $0x190] sm:$0xff]  ;;  %v338_v13 = vcombine.high %v336_v4, %v336_v4  ;;  %v356_v15 = vcombine.high %v36_v7, %v36_v7  ;;  %v37_v17 = vld [vmem:[%s3083_s0 + $0x78] sm:$0xff]  ;;  %v90_v19 = vld [vmem:[%s3084_s1 + $0x1a0] sm:$0xff]  ;;  %v363_v22 = vrot.slane %v36_v7, %v2818_v16 }
  0x28   :  { %1499 = vmatmul.mubr.f32.vlgmr.msra.gmra.mrb[14].mxu0 %v244_v14  ;;  %1569 = vmatmul.mubr.f32.vlgmr.msra.gmra.mrb[14].mxu1 %v251_v18  ;;  %v353_v14 = vrot.slane %v339_v5, %v2818_v16  ;;  %v93_v18 = vld [vmem:[%s3084_s1 + $0x1b8] sm:$0xff]  ;;  %v92_v20 = vld [vmem:[%s3084_s1 + $0x1b0] sm:$0xff]  ;;  %v354_v21 = vcombine.high %v346_v11, %v346_v11  ;;  %v373_v23 = vcombine.high %v37_v17, %v37_v17  ;;  %v95_v24 = vld [vmem:[%s3084_s1 + $0x1c8] sm:$0xff] }
  0x29   :  { %1575 = vmatpush1.xpose.msra.mxu0 %v70_v32  ;;  %1645 = vmatpush1.xpose.msra.mxu1 %v72_v33  ;;  %v370_v26 = vrot.slane %v356_v15, %v2818_v16  ;;  %v97_v27 = vld [vmem:[%s3084_s1 + $0x1d8] sm:$0xff]  ;;  %v96_v29 = vld [vmem:[%s3084_s1 + $0x1d0] sm:$0xff]  ;;  %v371_v30 = vcombine.high %v363_v22, %v363_v22  ;;  %v380_v31 = vrot.slane %v37_v17, %v2818_v16  ;;  %v99_v33 = vld [vmem:[%s3084_s1 + $0x1e8] sm:$0xff] }
  0x2a   :  { %1638 = vmatprep.mubr.f32.mxu0 %v269_v34  ;;  %1714 = vmatprep.subr.mxu0 %v75_v36  ;;  %v387_v32 = vrot.slane %v373_v23, %v2818_v16  ;;  %v98_v16 = vld [vmem:[%s3084_s1 + $0x1e0] sm:$0xff]  ;;  %v100_v36 = vld [vmem:[%s3084_s1 + $0x1f0] sm:$0xff]  ;;  %20 = vst.msk [vmem:[#allocation2] sm:$0x3] %vm19_vm0, %v2769_v39 }
  0x2b   :  { %1708 = vmatprep.mubr.f32.mxu1 %v270_v37  ;;  %1784 = vmatprep.subr.mxu1 %v77_v40  ;;  %v372_v34 = vcombine.high %v370_v26, %v370_v26  ;;  %v388_v37 = vcombine.high %v380_v31, %v380_v31 }
  0x2c   :  { %1639 = vmatmul.mubr.f32.vlgmr.msra.gmra.mrb[16].mxu0 %v261_v25  ;;  %1709 = vmatmul.mubr.f32.vlgmr.msra.gmra.mrb[16].mxu1 %v268_v28  ;;  %v355_v25 = vcombine.high %v353_v14, %v353_v14  ;;  %v94_v28 = vld [vmem:[%s3084_s1 + $0x1c0] sm:$0xff] }
  0x2d   :  { %1715 = vmatpush1.xpose.msra.mxu0 %v74_v42  ;;  %1785 = vmatpush1.xpose.msra.mxu1 %v76_v43 }
  0x2e   :  { %1778 = vmatprep.mubr.f32.mxu0 %v286_v44  ;;  %1854 = vmatprep.subr.mxu0 %v79_v46 }
  0x2f   :  { %1848 = vmatprep.mubr.f32.mxu1 %v287_v47  ;;  %1924 = vmatprep.subr.mxu1 %v81_v50 }
  0x30   :  { %1779 = vmatmul.mubr.f32.vlgmr.msra.gmra.mrb[18].mxu0 %v278_v35  ;;  %1849 = vmatmul.mubr.f32.vlgmr.msra.gmra.mrb[18].mxu1 %v285_v38  ;;  %v101_v35 = vld [vmem:[%s3084_s1 + $0x1f8] sm:$0xff]  ;;  %v389_v38 = vcombine.high %v387_v32, %v387_v32 }
  0x31   :  { %1855 = vmatpush1.xpose.msra.mxu0 %v78_v52  ;;  %1925 = vmatpush1.xpose.msra.mxu1 %v80_v53 }
  0x32   :  { %1918 = vmatprep.mubr.f32.mxu0 %v303_v54  ;;  %1994 = vmatprep.subr.mxu0 %v83_v56 }
  0x33   :  { %1988 = vmatprep.mubr.f32.mxu1 %v304_v57  ;;  %2064 = vmatprep.subr.mxu1 %v85_v60 }
  0x34   :  { %1919 = vmatmul.mubr.f32.vlgmr.msra.gmra.mrb[20].mxu0 %v295_v45  ;;  %1989 = vmatmul.mubr.f32.vlgmr.msra.gmra.mrb[20].mxu1 %v302_v48 }
  0x35   :  { %1995 = vmatpush1.xpose.msra.mxu0 %v82_v62  ;;  %2065 = vmatpush1.xpose.msra.mxu1 %v84_v63 }
  0x36   :  { %2058 = vmatprep.mubr.f32.mxu0 %v320_v0  ;;  %2134 = vmatprep.subr.mxu0 %v87_v2 }
  0x37   :  { %2128 = vmatprep.mubr.f32.mxu1 %v321_v3  ;;  %2204 = vmatprep.subr.mxu1 %v89_v6 }
  0x38   :  { %2059 = vmatmul.mubr.f32.vlgmr.msra.gmra.mrb[22].mxu0 %v312_v55  ;;  %2129 = vmatmul.mubr.f32.vlgmr.msra.gmra.mrb[22].mxu1 %v319_v58 }
  0x39   :  { %2135 = vmatpush1.xpose.msra.mxu0 %v86_v8  ;;  %2205 = vmatpush1.xpose.msra.mxu1 %v88_v9 }
  0x3a   :  { %2198 = vmatprep.mubr.f32.mxu0 %v337_v10  ;;  %2274 = vmatprep.subr.mxu0 %v91_v12 }
  0x3b   :  { %2268 = vmatprep.mubr.f32.mxu1 %v338_v13  ;;  %2344 = vmatprep.subr.mxu1 %v93_v18 }
  0x3c   :  { %2199 = vmatmul.mubr.f32.vlgmr.msra.gmra.mrb[24].mxu0 %v329_v1  ;;  %2269 = vmatmul.mubr.f32.vlgmr.msra.gmra.mrb[24].mxu1 %v336_v4 }
  0x3d   :  { %2275 = vmatpush1.xpose.msra.mxu0 %v90_v19  ;;  %2345 = vmatpush1.xpose.msra.mxu1 %v92_v20 }
  0x3e   :  { %2338 = vmatprep.mubr.f32.mxu0 %v354_v21  ;;  %2414 = vmatprep.subr.mxu0 %v95_v24 }
  0x3f   :  { %2408 = vmatprep.mubr.f32.mxu1 %v355_v25  ;;  %2484 = vmatprep.subr.mxu1 %v97_v27 }
  0x40   :  { %2339 = vmatmul.mubr.f32.vlgmr.msra.gmra.mrb[26].mxu0 %v346_v11  ;;  %2409 = vmatmul.mubr.f32.vlgmr.msra.gmra.mrb[26].mxu1 %v353_v14 }
  0x41   :  { %2415 = vmatpush1.xpose.msra.mxu0 %v94_v28  ;;  %2485 = vmatpush1.xpose.msra.mxu1 %v96_v29 }
  0x42   :  { %2478 = vmatprep.mubr.f32.mxu0 %v371_v30  ;;  %2554 = vmatprep.subr.mxu0 %v99_v33 }
  0x43   :  { %2548 = vmatprep.mubr.f32.mxu1 %v372_v34  ;;  %2624 = vmatprep.subr.mxu1 %v101_v35 }
  0x44   :  { %2479 = vmatmul.mubr.f32.vlgmr.msra.gmra.mrb[28].mxu0 %v363_v22  ;;  %2549 = vmatmul.mubr.f32.vlgmr.msra.gmra.mrb[28].mxu1 %v370_v26 }
  0x45   :  { %2555 = vmatpush1.xpose.msra.mxu0 %v98_v16  ;;  %2625 = vmatpush1.xpose.msra.mxu1 %v100_v36 }
  0x46   :  { %2618 = vmatprep.mubr.f32.mxu0 %v388_v37  ;;  %2688 = vmatprep.mubr.f32.mxu1 %v389_v38 }
  0x48   :  { %2619 = vmatmul.mubr.f32.vlgmr.msra.gmra.mrb[30].mxu0 %v380_v31  ;;  %2689 = vmatmul.mubr.f32.vlgmr.msra.gmra.mrb[30].mxu1 %v387_v32 }
  0xdf   :  { %v520_v40 = vpop.f32.mrb[0].mxu0  ;;  %v590_v41 = vpop.f32.mrb[0].mxu1 }
  0xe0   :  { %v591_v42 = vadd.f32 %v590_v41, %v520_v40  ;;  %v522_v43 = vpop.f32.mrb[1].mxu0  ;;  %v592_v44 = vpop.f32.mrb[1].mxu1 }
  0xe3   :  { %v660_v45 = vpop.f32.mrb[2].mxu0  ;;  %v730_v46 = vpop.f32.mrb[2].mxu1 }
  0xe4   :  { %v661_v47 = vadd.f32 %v660_v45, %v591_v42  ;;  %v662_v48 = vpop.f32.mrb[3].mxu0  ;;  %v732_v49 = vpop.f32.mrb[3].mxu1 }
  0xe6   :  { %v731_v50 = vadd.f32 %v730_v46, %v661_v47 }
  0xe7   :  { %v800_v51 = vpop.f32.mrb[4].mxu0  ;;  %v870_v52 = vpop.f32.mrb[4].mxu1 }
  0xe8   :  { %v801_v53 = vadd.f32 %v800_v51, %v731_v50  ;;  %v802_v54 = vpop.f32.mrb[5].mxu0  ;;  %v872_v55 = vpop.f32.mrb[5].mxu1 }
  0xea   :  { %v871_v56 = vadd.f32 %v870_v52, %v801_v53 }
  0xeb   :  { %v940_v57 = vpop.f32.mrb[6].mxu0  ;;  %v1010_v58 = vpop.f32.mrb[6].mxu1 }
  0xec   :  { %v941_v59 = vadd.f32 %v940_v57, %v871_v56  ;;  %v942_v60 = vpop.f32.mrb[7].mxu0  ;;  %v1012_v61 = vpop.f32.mrb[7].mxu1 }
  0xee   :  { %v1011_v62 = vadd.f32 %v1010_v58, %v941_v59 }
  0xef   :  { %v1080_v63 = vpop.f32.mrb[8].mxu0  ;;  %v1150_v0 = vpop.f32.mrb[8].mxu1 }
  0xf0   :  { %v1081_v1 = vadd.f32 %v1080_v63, %v1011_v62  ;;  %v1082_v2 = vpop.f32.mrb[9].mxu0  ;;  %v1152_v3 = vpop.f32.mrb[9].mxu1 }
  0xf2   :  { %v1151_v4 = vadd.f32 %v1150_v0, %v1081_v1 }
  0xf3   :  { %v1220_v5 = vpop.f32.mrb[10].mxu0  ;;  %v1290_v6 = vpop.f32.mrb[10].mxu1 }
  0xf4   :  { %v1221_v7 = vadd.f32 %v1220_v5, %v1151_v4  ;;  %v1222_v8 = vpop.f32.mrb[11].mxu0  ;;  %v1292_v9 = vpop.f32.mrb[11].mxu1 }
  0xf5   :  { %v2724_v9 = vld [vmem:[%s3085_s2] ss:$0 sm:$0xff] }
  0xf6   :  { %v1291_v10 = vadd.f32 %v1290_v6, %v1221_v7  ;;  %v21_v6 = vld [vmem:[#allocation2] sm:$0x3] }
  0xf7   :  { %v1360_v11 = vpop.f32.mrb[12].mxu0  ;;  %v1430_v12 = vpop.f32.mrb[12].mxu1 }
  0xf8   :  { %v1361_v13 = vadd.f32 %v1360_v11, %v1291_v10  ;;  %v1362_v14 = vpop.f32.mrb[13].mxu0  ;;  %v1432_v15 = vpop.f32.mrb[13].mxu1 }
  0xfa   :  { %v1431_v17 = vadd.f32 %v1430_v12, %v1361_v13 }
  0xfb   :  { %v1500_v18 = vpop.f32.mrb[14].mxu0  ;;  %v1570_v19 = vpop.f32.mrb[14].mxu1 }
  0xfc   :  { %v1501_v20 = vadd.f32 %v1500_v18, %v1431_v17  ;;  %v1502_v21 = vpop.f32.mrb[15].mxu0  ;;  %v1572_v22 = vpop.f32.mrb[15].mxu1 }
  0xfe   :  { %v1571_v23 = vadd.f32 %v1570_v19, %v1501_v20 }
  0xff   :  { %v1640_v24 = vpop.f32.mrb[16].mxu0  ;;  %v1710_v25 = vpop.f32.mrb[16].mxu1 }
 0x100   :  { %v1641_v26 = vadd.f32 %v1640_v24, %v1571_v23  ;;  %v1642_v27 = vpop.f32.mrb[17].mxu0  ;;  %v1712_v28 = vpop.f32.mrb[17].mxu1 }
 0x102   :  { %v1711_v29 = vadd.f32 %v1710_v25, %v1641_v26 }
 0x103   :  { %v1780_v30 = vpop.f32.mrb[18].mxu0  ;;  %v1850_v31 = vpop.f32.mrb[18].mxu1 }
 0x104   :  { %v1781_v32 = vadd.f32 %v1780_v30, %v1711_v29  ;;  %v1782_v33 = vpop.f32.mrb[19].mxu0  ;;  %v1852_v34 = vpop.f32.mrb[19].mxu1 }
 0x106   :  { %v1851_v35 = vadd.f32 %v1850_v31, %v1781_v32 }
 0x107   :  { %v1920_v16 = vpop.f32.mrb[20].mxu0  ;;  %v1990_v36 = vpop.f32.mrb[20].mxu1 }
 0x108   :  { %v1921_v37 = vadd.f32 %v1920_v16, %v1851_v35  ;;  %v1922_v38 = vpop.f32.mrb[21].mxu0  ;;  %v1992_v39 = vpop.f32.mrb[21].mxu1 }
 0x10a   :  { %v1991_v40 = vadd.f32 %v1990_v36, %v1921_v37 }
 0x10b   :  { %v2060_v41 = vpop.f32.mrb[22].mxu0  ;;  %v2130_v42 = vpop.f32.mrb[22].mxu1 }
 0x10c   :  { %v2061_v43 = vadd.f32 %v2060_v41, %v1991_v40  ;;  %v2062_v44 = vpop.f32.mrb[23].mxu0  ;;  %v2132_v45 = vpop.f32.mrb[23].mxu1 }
 0x10e   :  { %v2131_v46 = vadd.f32 %v2130_v42, %v2061_v43 }
 0x10f   :  { %v2200_v47 = vpop.f32.mrb[24].mxu0  ;;  %v2270_v48 = vpop.f32.mrb[24].mxu1 }
 0x110   :  { %v2201_v49 = vadd.f32 %v2200_v47, %v2131_v46  ;;  %v2202_v50 = vpop.f32.mrb[25].mxu0  ;;  %v2272_v51 = vpop.f32.mrb[25].mxu1 }
 0x112   :  { %v2271_v52 = vadd.f32 %v2270_v48, %v2201_v49 }
 0x113   :  { %v2340_v53 = vpop.f32.mrb[26].mxu0  ;;  %v2410_v54 = vpop.f32.mrb[26].mxu1 }
 0x114   :  { %v2341_v55 = vadd.f32 %v2340_v53, %v2271_v52  ;;  %v2342_v56 = vpop.f32.mrb[27].mxu0  ;;  %v2412_v57 = vpop.f32.mrb[27].mxu1 }
 0x116   :  { %v2411_v58 = vadd.f32 %v2410_v54, %v2341_v55 }
 0x117   :  { %v2480_v59 = vpop.f32.mrb[28].mxu0  ;;  %v2550_v60 = vpop.f32.mrb[28].mxu1 }
 0x118   :  { %v2481_v61 = vadd.f32 %v2480_v59, %v2411_v58  ;;  %v2482_v62 = vpop.f32.mrb[29].mxu0  ;;  %v2552_v63 = vpop.f32.mrb[29].mxu1 }
 0x11a   :  { %v2551_v0 = vadd.f32 %v2550_v60, %v2481_v61 }
 0x11b   :  { %v2620_v1 = vpop.f32.mrb[30].mxu0  ;;  %v2690_v2 = vpop.f32.mrb[30].mxu1 }
 0x11c   :  { %v2621_v3 = vadd.f32 %v2620_v1, %v2551_v0  ;;  %v2622_v4 = vpop.f32.mrb[31].mxu0  ;;  %v2692_v5 = vpop.f32.mrb[31].mxu1 }
 0x11e   :  { %v2691_v7 = vadd.f32 %v2690_v2, %v2621_v3 }
 0x120   :  { %v2694_v8 = vadd.f32 %v2691_v7, %v21_v6 }
 0x122   :  { %2696 = vst.msk [vmem:[#allocation2] sm:$0x3] %vm19_vm0, %v2694_v8 }
 0x129   :  { %v2700_v10 = vld [vmem:[#allocation2] sm:$0x3] }
 0x12a   :  { %v2708_v11 = vadd.f32 %v2724_v9, %v2700_v10 }
 0x12c   :  { %2709 = vst.msk [vmem:[#allocation3] sm:$0x3] %vm19_vm0, %v2708_v11 }
 0x12d   :  { %2755 = shalt.err (!%p2752_p4)
}
 0x12e   :  { %s2756_s15 = scalar_lea.hbm %s3086_s3, 32 }
 0x12f   :  { %p2757_p5 = scmp.ne.s32.totalorder %s3086_s3, %s2756_s15  ;;  %p2760_p6 = scmp.lt.u32.totalorder %s2756_s15, %s3086_s3 }
 0x131   :  { %p2762_p7 = pnand %p2760_p6, %p2757_p5 }
 0x133   :  { %2765 = shalt.err (!%p2762_p7)
}
 0x134   :  { %2719 = dma.vmem_to_hbm [thread:$0]  %s2717_s11, 32, %s3086_s3, [#allocation4]  }
 0x135   :  { %2766 = dma.done.wait [#allocation4], 32  }
 0x136   :  { %2767 = vsyncadd [#allocation4], 4294967264 }
 0x137   :  { %2723 = vsyncpa [#allocation4], 1 }

</bundles_post_ra>
